<compile_context>
chip_gen: v6e
topology: v6e:2x2x1
jax: 0.10.0
libtpu: 0.0.40
codegen_flags: <defaults>
</compile_context>

<pallas_src>
import math

import jax
import jax.numpy as jnp
from jax.experimental import pallas as pl
from jax.experimental.pallas import tpu as pltpu


def _round_up(x, m):
    return ((x + m - 1) // m) * m


def _make_emb_kernel(n_chunks, chunk_v):
    """One-hot-matmul gather kernel.

    ids_ref: (T, 1) int32 token ids for this tile (VMEM)
    tab_ref: (Vpad, D) f32 embedding table (VMEM-resident across the grid)
    out_ref: (T, D) f32 output tile
    The vocab dim is processed in `n_chunks` chunks of `chunk_v` rows so the
    (T, chunk_v) one-hot intermediate stays bounded.
    """

    def kernel(ids_ref, tab_ref, out_ref):
        T = ids_ref.shape[0]
        D = tab_ref.shape[1]
        ids = ids_ref[...]                                          # (T, 1)

        def partial(v_start, v_size):
            col = jax.lax.broadcasted_iota(jnp.int32, (T, v_size), 1) + v_start
            onehot = (ids == col).astype(tab_ref.dtype)              # exact 0/1
            return jnp.dot(
                onehot,
                tab_ref[pl.ds(v_start, v_size), :],
                preferred_element_type=jnp.float32,
                precision=jax.lax.Precision.HIGHEST,                 # exact gather
            )

        if n_chunks == 1:
            acc = partial(0, chunk_v)
        else:
            def body(c, acc):
                v0 = pl.multiple_of(c * chunk_v, chunk_v)
                return acc + partial(v0, chunk_v)
            acc = jax.lax.fori_loop(0, n_chunks, body,
                                    jnp.zeros((T, D), jnp.float32))

        out_ref[...] = acc.astype(out_ref.dtype)

    return kernel


def word_embedding(word_ids, emb_table, *, tokens_per_tile=1024, vocab_chunk=1024):
    """Equivalent of self.wordEmb(wordBatch).

    word_ids:  (B, S) int32
    emb_table: (V, D) float32
    returns    (B, S, D) float32
    """
    B, S = word_ids.shape
    V, D = emb_table.shape
    N = B * S

    # ---- pad vocab to lane / MXU width (multiple of 256 covers v6e/v7x) ----
    Vpad = _round_up(V, 256)

    # ---- in-kernel vocab chunking (bounds the one-hot slab) ----
    if Vpad <= vocab_chunk:
        chunk_v, n_chunks = Vpad, 1
    else:
        chunk_v = _round_up(vocab_chunk, 256)
        Vpad = _round_up(Vpad, chunk_v)
        n_chunks = Vpad // chunk_v

    table = emb_table
    if Vpad != V:
        table = jnp.pad(emb_table, ((0, Vpad - V), (0, 0)))

    # ---- generation-aware VMEM budget ----
    try:
        vmem_cap = int(pltpu.get_tpu_info().vmem_capacity_bytes)
    except Exception:
        vmem_cap = 64 << 20              # conservative: v7x per-TensorCore VMEM
    vmem_cap_use = int(vmem_cap * 0.75)  # leave headroom for Mosaic scratch

    table_bytes = 4 * Vpad * D
    # Resident-table cutover: if the table would eat most of usable VMEM, use
    # a plain XLA gather instead of the one-hot kernel.
    if table_bytes > int(0.6 * vmem_cap_use):
        return jnp.take(emb_table, word_ids, axis=0)

    flat = word_ids.reshape(-1).astype(jnp.int32)

    # Token tile: sublane-aligned, big enough to amortise grid overhead, small
    # enough that G >= 2 (v7x megacore splits the parallel token axis).
    half = _round_up(max((N + 1) // 2, 8), 8)
    T = min(tokens_per_tile, half)
    Npad = _round_up(N, T)
    if Npad != N:
        # Padding ids are 0: they gather row 0 and are sliced off afterwards.
        flat = jnp.pad(flat, (0, Npad - N))
    ids_col = flat.reshape(Npad, 1)
    G = Npad // T

    vmem_need = (table_bytes                              # table (single-buffered)
                 + 2 * 4 * T * D                          # output tile (double-buffered)
                 + 2 * 4 * T                              # id tile (double-buffered)
                 + 4 * T * chunk_v                        # one-hot slab
                 + (4 * T * D if n_chunks > 1 else 0)     # f32 accumulator carry
                 + (2 << 20))                             # slack
    vmem_limit = int(min(max(vmem_need, 32 << 20), vmem_cap_use))

    kernel = _make_emb_kernel(n_chunks, chunk_v)

    def _call(single_buffer_table):
        if single_buffer_table:
            # Constant block index -> double-buffering the table buys nothing;
            # single-buffer it to halve its VMEM footprint.
            table_spec = pl.BlockSpec((Vpad, D), lambda i: (0, 0),
                                      pipeline_mode=pl.Buffered(1))
        else:
            table_spec = pl.BlockSpec((Vpad, D), lambda i: (0, 0))
        return pl.pallas_call(
            kernel,
            out_shape=jax.ShapeDtypeStruct((Npad, D), emb_table.dtype),
            grid_spec=pltpu.PrefetchScalarGridSpec(
                num_scalar_prefetch=0,
                grid=(G,),
                in_specs=[
                    pl.BlockSpec((T, 1), lambda i: (i, 0)),   # token-id tile
                    table_spec,                               # resident table
                ],
                out_specs=pl.BlockSpec((T, D), lambda i: (i, 0)),
            ),
            compiler_params=pltpu.CompilerParams(
                dimension_semantics=("parallel",),
                vmem_limit_bytes=vmem_limit,
            ),
        )(ids_col, table)

    try:
        out = _call(True)
    except Exception:
        # pipeline_mode=pl.Buffered(1) unsupported in this jax build; the only
        # cost of the fallback is a second buffer for the constant table block.
        out = _call(False)

    return out[:N].reshape(B, S, D)


def build_embedding_table(key, vocab_size, emb_dim, pad_idx, unk_idx,
                          unk_word_zero=True):
    """Mirrors WordEmbModel.__init__: xavier_normal init, zero pad (and unk) rows."""
    std = math.sqrt(2.0 / (vocab_size + emb_dim))  # torch xavier_normal, gain=1
    table = std * jax.random.normal(key, (vocab_size, emb_dim), dtype=jnp.float32)
    table = table.at[pad_idx].set(0.0)
    if unk_word_zero:
        table = table.at[unk_idx].set(0.0)
    return table


if __name__ == "__main__":
    key = jax.random.PRNGKey(0)
    k_tab, k1, k2, k3 = jax.random.split(key, 4)

    # Small shapes: vocab=64 (len(wordIdx)), emb_dim=128.
    VOCAB, EMB_DIM = 64, 128
    PAD_IDX, UNK_IDX = 0, 1

    emb_table = build_embedding_table(k_tab, VOCAB, EMB_DIM, PAD_IDX, UNK_IDX,
                                      unk_word_zero=True)

    # Case 1: batch=2, seq=8 -- exercises pad/unk rows and a 2-step grid.
    B, S = 2, 8
    ids1 = jax.random.randint(k1, (B, S), 0, VOCAB, dtype=jnp.int32)
    ids1 = ids1.at[0, 0].set(PAD_IDX).at[1, 0].set(UNK_IDX)
    out1 = jax.block_until_ready(word_embedding(ids1, emb_table))
    ref1 = jnp.take(emb_table, ids1, axis=0)
    assert out1.shape == (B, S, EMB_DIM)
    assert jnp.allclose(out1, ref1), "Pallas embedding lookup mismatch (small case)"

    # Case 2: N=300 -> non-multiple-of-tile token count (padding + slicing), G=2.
    B2, S2 = 3, 100
    ids2 = jax.random.randint(k2, (B2, S2), 0, VOCAB, dtype=jnp.int32)
    out2 = jax.block_until_ready(word_embedding(ids2, emb_table))
    ref2 = jnp.take(emb_table, ids2, axis=0)
    assert out2.shape == (B2, S2, EMB_DIM)
    assert jnp.allclose(out2, ref2), "Pallas embedding lookup mismatch (tiled case)"

    # Case 3: N=4096 -> hits the full 1024-token tile (T=1024, G=4).
    B3, S3 = 8, 512
    ids3 = jax.random.randint(k3, (B3, S3), 0, VOCAB, dtype=jnp.int32)
    out3 = jax.block_until_ready(word_embedding(ids3, emb_table))
    ref3 = jnp.take(emb_table, ids3, axis=0)
    assert out3.shape == (B3, S3, EMB_DIM)
    assert jnp.allclose(out3, ref3), "Pallas embedding lookup mismatch (large case)"

    print("KERNEL_OK")
</pallas_src>

<mosaic_0001>
module attributes {stable_mosaic.version = 11 : i64} {
  func.func @kernel(%arg0: i32, %arg1: memref<8x1xi32, #tpu.memory_space<vmem>>, %arg2: memref<256x128xf32, #tpu.memory_space<vmem>>, %arg3: memref<8x128xf32, #tpu.memory_space<vmem>>) attributes {dimension_semantics = [#tpu.dimension_semantics<parallel>], iteration_bounds = array<i64: 2>, scalar_prefetch = 0 : i64, scratch_operands = 0 : i64, tpu.core_type = #tpu.core_type<tc>, window_params = [{transform_indices = @transform_0, window_bounds = array<i64: 8, 1>}, {pipeline_mode = #tpu.pipeline_mode<synchronous>, transform_indices = @transform_1, window_bounds = array<i64: 256, 128>}, {transform_indices = @transform_2, window_bounds = array<i64: 8, 128>}]} {
    %c0 = arith.constant 0 : index
    %c0_0 = arith.constant 0 : index
    %0 = vector.load %arg1[%c0, %c0_0] : memref<8x1xi32, #tpu.memory_space<vmem>>, vector<8x1xi32>
    %1 = tpu.iota {dimensions = array<i32: 1>} : vector<8x256xi32>
    %c0_i32 = arith.constant 0 : i32
    %2 = vector.broadcast %c0_i32 : i32 to vector<8x256xi32>
    %3 = arith.addi %1, %2 : vector<8x256xi32>
    %4 = vector.broadcast %0 : vector<8x1xi32> to vector<8x256xi32>
    %5 = arith.cmpi eq, %4, %3 : vector<8x256xi32>
    %6 = arith.extui %5 : vector<8x256xi1> to vector<8x256xi32>
    %7 = arith.sitofp %6 : vector<8x256xi32> to vector<8x256xf32>
    %c0_1 = arith.constant 0 : index
    %c0_2 = arith.constant 0 : index
    %8 = vector.load %arg2[%c0_1, %c0_2] : memref<256x128xf32, #tpu.memory_space<vmem>>, vector<256x128xf32>
    %cst = arith.constant dense<0.000000e+00> : vector<8x128xf32>
    %9 = tpu.matmul %7, %8, %cst {dimension_numbers = #tpu.dot_dimension_numbers<[1], [0], [0], [1], [0, 0, 1, 1], [], []>, precision = #tpu.contract_precision<fp32>} : vector<8x256xf32>, vector<256x128xf32>, vector<8x128xf32> -> vector<8x128xf32>
    %c0_3 = arith.constant 0 : index
    %c0_4 = arith.constant 0 : index
    %10 = vector.load %arg3[%c0_3, %c0_4] : memref<8x128xf32, #tpu.memory_space<vmem>>, vector<8x128xf32>
    tpu.vector_store %arg3[%c0_3, %c0_4], %9 {strides = array<i32>} : memref<8x128xf32, #tpu.memory_space<vmem>>, vector<8x128xf32>,
    return
  }
  func.func @transform_0(%arg0: i32) -> (i32, i32) {
    %c0_i32 = arith.constant 0 : i32
    %c0_i32_0 = arith.constant 0 : i32
    return %arg0, %c0_i32 : i32, i32
  }
  func.func @transform_1(%arg0: i32) -> (i32, i32) {
    %c0_i32 = arith.constant 0 : i32
    %c0_i32_0 = arith.constant 0 : i32
    %c0_i32_1 = arith.constant 0 : i32
    return %c0_i32, %c0_i32_0 : i32, i32
  }
  func.func @transform_2(%arg0: i32) -> (i32, i32) {
    %c0_i32 = arith.constant 0 : i32
    %c0_i32_0 = arith.constant 0 : i32
    return %arg0, %c0_i32 : i32, i32
  }
}

module attributes {stable_mosaic.version = 11 : i64} {
  func.func @kernel(%arg0: i32, %arg1: memref<8x1xi32, #tpu.memory_space<vmem>>, %arg2: memref<256x128xf32, #tpu.memory_space<vmem>>, %arg3: memref<8x128xf32, #tpu.memory_space<vmem>>) attributes {dimension_semantics = [#tpu.dimension_semantics<parallel>], iteration_bounds = array<i64: 2>, scalar_prefetch = 0 : i64, scratch_operands = 0 : i64, tpu.core_type = #tpu.core_type<tc>, window_params = [{transform_indices = @transform_0, window_bounds = array<i64: 8, 1>}, {pipeline_mode = #tpu.pipeline_mode<synchronous>, transform_indices = @transform_1, window_bounds = array<i64: 256, 128>}, {transform_indices = @transform_2, window_bounds = array<i64: 8, 128>}]} {
    %c0 = arith.constant 0 : index
    %c0_0 = arith.constant 0 : index
    %0 = vector.load %arg1[%c0, %c0_0] : memref<8x1xi32, #tpu.memory_space<vmem>>, vector<8x1xi32>
    %1 = tpu.iota {dimensions = array<i32: 1>} : vector<8x256xi32>
    %c0_i32 = arith.constant 0 : i32
    %2 = vector.broadcast %c0_i32 : i32 to vector<8x256xi32>
    %3 = arith.addi %1, %2 : vector<8x256xi32>
    %4 = vector.broadcast %0 : vector<8x1xi32> to vector<8x256xi32>
    %5 = arith.cmpi eq, %4, %3 : vector<8x256xi32>
    %6 = arith.extui %5 : vector<8x256xi1> to vector<8x256xi32>
    %7 = arith.sitofp %6 : vector<8x256xi32> to vector<8x256xf32>
    %c0_1 = arith.constant 0 : index
    %c0_2 = arith.constant 0 : index
    %8 = vector.load %arg2[%c0_1, %c0_2] : memref<256x128xf32, #tpu.memory_space<vmem>>, vector<256x128xf32>
    %cst = arith.constant dense<0.000000e+00> : vector<8x128xf32>
    %9 = tpu.matmul %7, %8, %cst {dimension_numbers = #tpu.dot_dimension_numbers<[1], [0], [0], [1], [0, 0, 1, 1], [], []>, precision = #tpu.contract_precision<fp32>} : vector<8x256xf32>, vector<256x128xf32>, vector<8x128xf32> -> vector<8x128xf32>
    %c0_3 = arith.constant 0 : index
    %c0_4 = arith.constant 0 : index
    %10 = vector.load %arg3[%c0_3, %c0_4] : memref<8x128xf32, #tpu.memory_space<vmem>>, vector<8x128xf32>
    tpu.vector_store %arg3[%c0_3, %c0_4], %9 {strides = array<i32>} : memref<8x128xf32, #tpu.memory_space<vmem>>, vector<8x128xf32>,
    return
  }
  func.func @transform_0(%arg0: i32) -> (i32, i32) {
    %c0_i32 = arith.constant 0 : i32
    %c0_i32_0 = arith.constant 0 : i32
    return %arg0, %c0_i32 : i32, i32
  }
  func.func @transform_1(%arg0: i32) -> (i32, i32) {
    %c0_i32 = arith.constant 0 : i32
    %c0_i32_0 = arith.constant 0 : i32
    %c0_i32_1 = arith.constant 0 : i32
    return %c0_i32, %c0_i32_0 : i32, i32
  }
  func.func @transform_2(%arg0: i32) -> (i32, i32) {
    %c0_i32 = arith.constant 0 : i32
    %c0_i32_0 = arith.constant 0 : i32
    return %arg0, %c0_i32 : i32, i32
  }
}

</mosaic_0001>

<bundles_post_ra>
// kernel: tpu_custom_call.1
= control target key start
LH: loop header
LB: loop body
LE: loop exit
PB: predicated region body
PF: predicated region fallthrough
CT: control target
= control target key end

     0   :  { %7 = vsyncpa [#allocation3], 0  ;;  %s2178_s0 = inlined_call_operand.vmem [shape: s32[16,1], index: 0, kind: input, shape index: {}]   ;;  %s2179_s1 = inlined_call_operand.hbm [shape: f32[256,128], index: 1, kind: input, shape index: {}]   ;;  %s2180_s2 = inlined_call_operand.hbm [shape: f32[16,128], index: 2, kind: output, shape index: {}]  }
   0x1   :  { %8 = vsyncpa [#allocation4], 0 }
   0x2   :  { %10 = vsyncpa [#allocation4 + $0x1], 0  ;;  %s1547_s9 = smov 0   ;;  %s1549_s10 = smov 0  }
   0x3   :  { %s1551_s11 = smov 0   ;;  %s1553_s12 = smov 0  }
   0x4 LB: > { %s1568_s13 = sadd.s32 4294967295, %s1523_s12   ;;  %s1147_s14 = sadd.s32 4294967294, %s1523_s12   ;;  %s1523_s12 = sphi %s1553_s12, %s2323_s12   ;;  %s1519_s11 = sphi %s1551_s11, %s2322_s11   ;;  %s1515_s10 = sphi %s1549_s10, %s2321_s10   ;;  %s1511_s9 = sphi %s1547_s9, %s2320_s9  }
   0x5   : > { %s1572_s15 = sadd.s32 1, %s1523_s12   ;;  %s70_s16 = sadd.s32 1, %s1519_s11 }
   0x6   : > { %s67_s17 = ssub.s32 %s1523_s12, %s1572_s15  ;;  %p80_p0 = scmp.ne.s32.totalorder %s1519_s11, %s1515_s10 }
   0x7   : > { %p68_p1 = scmp.eq.s32.totalorder %s67_s17, 0  ;;  %p81_p2 = scmp.eq.s32.totalorder %s1568_s13, 1 }
   0x8   : > { %p86_p3 = scmp.ne.s32.totalorder %s1515_s10, %s1511_s9  ;;  %p87_p4 = scmp.eq.s32.totalorder %s1147_s14, 1 }
   0x9   : > { %s1583_s18 = scalar_select %p68_p1, %s1519_s11, %s70_s16  }
   0xa   : > { %p1585_p5 = por %p81_p2, %p80_p0  ;;  %p1589_p6 = por %p87_p4, %p86_p3 }
   0xb   : > { %p1148_p7 = scmp.ge.s32.totalorder %s1523_s12, 1  ;;  %p94_p8 = scmp.lt.s32.totalorder %s1523_s12, 3 }
   0xc   : > { %s2243_s20 = scalar_select %p1589_p6, 1, 0 }
   0xd   : > { %p1391_p9 = scmp.eq.s32.totalorder %s1568_s13, 0  ;;  %p1596_p10 = pnand %p1148_p7, %p94_p8 }
   0xe   : > { %s1525_s22 = smov [#allocation2]  }
   0xf   : > { %s106_s23 = sshll.u32 %s1525_s22, 4  ;;  %p1383_p11 = pneg %p1596_p10  ;;  %s107_s23 = int_to_ptr.vmem [resolvable:$true] %s106_s23 }
  0x10   : > { %s1444_s24 = scalar_lea.vmem %s107_s23, 4096  ;;  %p1452_p3 = scmp.lt.s32.totalorder %s107_s23, %s107_s23 }
  0x11   : > { %p1384_p12 = pnand %p1391_p9, %p1383_p11  ;;  %p1445_p0 = scmp.ne.s32.totalorder %s107_s23, %s1444_s24 }
  0x12   : > { %p1453_p4 = scmp.lt.s32.totalorder %s1444_s24, %s1444_s24 }
  0x13   : > { %p1435_p13 = pneg %p1384_p12 }
  0x14   : > { %p1454_p6 = por %p1453_p4, %p1452_p3 }
  0x15   : > { %p1447_p1 = pnand %p1445_p0, %p1435_p13 }
  0x17   : > { %p1448_p2 = pneg %p1447_p1 }
  0x19   : > { %p1455_p7 = pnand %p1454_p6, %p1448_p2 }
  0x1b   : > { %1458 = shalt.err (!%p1455_p7)
}
  0x1c   : > { %s1526_s25 = smov 128   ;;  %s1527_s26 = smov 8  }
  0x1d   : > { %1386 = dma.hbm_to_vmem [thread:$0]  (!%p1384_p12), %s2179_s1, 4096, %s107_s23, [#allocation3], %s1526_s25, %s1526_s25, %s1527_s26  }
  0x1e   : > { %129 = sbr.rel (%p1596_p10) target bundleno = 458 (0x1ca), region = 28 }
  0x23   : > { %1502 = dma.done.wait (%p1391_p9), [#allocation3], 4096  }
  0x24   : > { %1504 = vsyncadd (%p1391_p9), [#allocation3], 4294963200  ;;  %p150_p8 = scmp.lt.s32.totalorder %s1568_s13, 1  ;;  %v1528_v0 = vmov 0   ;;  %v198_v2 = vld [vmem:[#allocation2 + $0xf8] sm:$0xff]  ;;  %v197_v6 = vld [vmem:[#allocation2 + $0xf0] sm:$0xff] }
  0x25   : > { %1432 = vset.pattern.permute.xlu0 %v1528_v0  ;;  %v182_v3 = vld [vmem:[#allocation2 + $0x78] sm:$0xff]  ;;  %v1618_v4 = vand.u32 4294901760, %v198_v2  ;;  %v181_v7 = vld [vmem:[#allocation2 + $0x70] sm:$0xff]  ;;  %v196_v8 = vld [vmem:[#allocation2 + $0xe8] sm:$0xff]  ;;  %v1622_v9 = vand.u32 4294901760, %v197_v6  ;;  %s147_s6 = sand.u32 1, %s1515_s10  }
  0x26   : > { %s151_s29 = scalar_select %p150_p8, %s1568_s13, 1  ;;  %v1620_v5 = vand.u32 4294901760, %v182_v3  ;;  %v1624_v10 = vand.u32 4294901760, %v181_v7  ;;  %v1626_v11 = vand.u32 4294901760, %v196_v8  ;;  %v180_v12 = vld [vmem:[#allocation2 + $0x68] sm:$0xff]  ;;  %v195_v13 = vld [vmem:[#allocation2 + $0xe0] sm:$0xff] }
  0x27   : > { %v179_v14 = vld [vmem:[#allocation2 + $0x60] sm:$0xff]  ;;  %v1629_v15 = vsub.f32 %v198_v2, %v1618_v4  ;;  %v1634_v17 = vand.u32 4294901760, %v180_v12  ;;  %v1636_v18 = vand.u32 4294901760, %v195_v13  ;;  %1167 = vmatprep.subr.mxu0 %v1618_v4  ;;  %v1640_v19 = vsub.f32 %v197_v6, %v1622_v9  ;;  %v194_v39 = vld [vmem:[#allocation2 + $0xd8] sm:$0xff]  ;;  %v193_v45 = vld [vmem:[#allocation2 + $0xd0] sm:$0xff]  ;;  %s1153_s7 = sshll.u32 %s147_s6, 3 }
  0x28   : > { %s1154_s30 = sshll.u32 %s151_s29, 3  ;;  %v1632_v16 = vsub.f32 %v182_v3, %v1620_v5  ;;  %v1643_v20 = vsub.f32 %v181_v7, %v1624_v10  ;;  %v1646_v21 = vsub.f32 %v196_v8, %v1626_v11  ;;  %v1648_v22 = vand.u32 4294901760, %v179_v14  ;;  %1168 = vmatpush3.msra.mxu0 %v1620_v5  ;;  %v178_v40 = vld [vmem:[#allocation2 + $0x58] sm:$0xff]  ;;  %v177_v46 = vld [vmem:[#allocation2 + $0x50] sm:$0xff]  ;;  %v192_v47 = vld [vmem:[#allocation2 + $0xc8] sm:$0xff]  ;;  %s1164_s8 = sshll.u32 %s1568_s13, 7 }
  0x29   : > { %s153_s5 = scalar_lea.vmem %s2178_s0, %s1154_s30  ;;  %v2200_v23 = vand.u32 4294901760, %v1629_v15  ;;  %v1654_v25 = vsub.f32 %v180_v12, %v1634_v17  ;;  %v1657_v26 = vsub.f32 %v195_v13, %v1636_v18  ;;  %1169 = vmatprep.subr.mxu0 %v1622_v9  ;;  %v2196_v27 = vand.u32 4294901760, %v1640_v19  ;;  %v176_v52 = vld [vmem:[#allocation2 + $0x48] sm:$0xff]  ;;  %v191_v53 = vld [vmem:[#allocation2 + $0xc0] sm:$0xff]  ;;  %s149_s14 = scalar_lea.vmem [#allocation5], %s1153_s7 }
  0x2a   : > { %v154_v1 = vld [vmem:[%s153_s5] sm:$0xff]  ;;  %v2197_v24 = vand.u32 4294901760, %v1632_v16  ;;  %v2195_v28 = vand.u32 4294901760, %v1643_v20  ;;  %v2192_v29 = vand.u32 4294901760, %v1646_v21  ;;  %v1664_v30 = vsub.f32 %v179_v14, %v1648_v22  ;;  %1170 = vmatpush3.msra.mxu0 %v1624_v10  ;;  %s1076_s16 = sshll.u32 %s149_s14, 4  ;;  %s1074_s22 = scalar_lea.hbm %s2180_s2, %s1164_s8  ;;  %s1077_s16 = int_to_ptr.vmem [resolvable:$true] %s1076_s16 }
  0x2b   : > { %159 = vperm.xlu0 %1432, %v154_v1   ;;  %v427_v31 = vsub.f32 %v1629_v15, %v2200_v23  ;;  %v2191_v33 = vand.u32 4294901760, %v1654_v25  ;;  %v2190_v34 = vand.u32 4294901760, %v1657_v26  ;;  %1171 = vmatprep.subr.mxu0 %v1626_v11  ;;  %v434_v35 = vsub.f32 %v1640_v19, %v2196_v27  ;;  %v175_v58 = vld [vmem:[#allocation2 + $0x40] sm:$0xff]  ;;  %v170_v27 = vld [vmem:[#allocation2 + $0x18] sm:$0xff]  ;;  %v185_v23 = vld [vmem:[#allocation2 + $0x90] sm:$0xff]  ;;  %s1063_s23 = scalar_lea.sflag [#allocation4], %s147_s6 }
  0x2c   : > { %v315_v32 = vsub.f32 %v1632_v16, %v2197_v24  ;;  %v322_v36 = vsub.f32 %v1643_v20, %v2195_v28  ;;  %v441_v37 = vsub.f32 %v1646_v21, %v2192_v29  ;;  %v2188_v38 = vand.u32 4294901760, %v1664_v30  ;;  %1172 = vmatpush3.msra.mxu0 %v1634_v17  ;;  %v186_v28 = vld [vmem:[#allocation2 + $0x98] sm:$0xff]  ;;  %s1459_s24 = scalar_lea.vmem %s1077_s16, 128  ;;  %s1531_s25 = smov [#allocation5]  }
  0x2d   : > { %v428_v41 = vand.u32 4294901760, %v427_v31  ;;  %v329_v43 = vsub.f32 %v1654_v25, %v2191_v33  ;;  %v448_v44 = vsub.f32 %v1657_v26, %v2190_v34  ;;  %1173 = vmatprep.subr.mxu0 %v1636_v18  ;;  %v435_v48 = vand.u32 4294901760, %v434_v35  ;;  %p1460_p6 = scmp.ne.s32.totalorder %s1077_s16, %s1459_s24  ;;  %s1463_s26 = sshll.u32 %s1531_s25, 4  ;;  %s1464_s26 = int_to_ptr.vmem [resolvable:$false] %s1463_s26 }
  0x2e   : > { %v316_v42 = vand.u32 4294901760, %v315_v32  ;;  %v323_v49 = vand.u32 4294901760, %v322_v36  ;;  %v442_v50 = vand.u32 4294901760, %v441_v37  ;;  %v336_v51 = vsub.f32 %v1664_v30, %v2188_v38  ;;  %1174 = vmatpush3.msra.mxu0 %v1648_v22  ;;  %s1465_s13 = scalar_lea.vmem %s1464_s26, 256  ;;  %p1466_p11 = scmp.lt.s32.totalorder %s1077_s16, %s1464_s26 }
  0x2f   : > { %1202 = vmatprep.subr.mxu1 %v428_v41  ;;  %v330_v54 = vand.u32 4294901760, %v329_v43  ;;  %v449_v55 = vand.u32 4294901760, %v448_v44  ;;  %v1698_v56 = vand.u32 4294901760, %v194_v39  ;;  %v1700_v57 = vand.u32 4294901760, %v178_v40  ;;  %p1461_p9 = pnand %p1460_p6, %p1585_p5  ;;  %p1467_p12 = scmp.lt.s32.totalorder %s1465_s13, %s1459_s24 }
  0x30   : > { %1203 = vmatpush3.msra.mxu1 %v316_v42  ;;  %v337_v59 = vand.u32 4294901760, %v336_v51  ;;  %v1702_v60 = vand.u32 4294901760, %v193_v45  ;;  %v1704_v61 = vand.u32 4294901760, %v177_v46  ;;  %v1706_v62 = vand.u32 4294901760, %v192_v47 }
  0x31   : > { %1204 = vmatprep.subr.mxu1 %v435_v48  ;;  %v1709_v63 = vsub.f32 %v194_v39, %v1698_v56  ;;  %v1712_v0 = vsub.f32 %v178_v40, %v1700_v57  ;;  %v1714_v1 = vand.u32 4294901760, %v176_v52  ;;  %v1716_v2 = vand.u32 4294901760, %v191_v53  ;;  %1175 = vmatprep.subr.mxu0 %v1698_v56  ;;  %v174_v48 = vld [vmem:[#allocation2 + $0x38] sm:$0xff]  ;;  %p1462_p10 = pneg %p1461_p9  ;;  %p1468_p13 = por %p1467_p12, %p1466_p11 }
  0x32   : > { %1205 = vmatpush3.msra.mxu1 %v323_v49  ;;  %v1720_v3 = vsub.f32 %v193_v45, %v1702_v60  ;;  %v1723_v6 = vsub.f32 %v177_v46, %v1704_v61  ;;  %v1726_v7 = vsub.f32 %v192_v47, %v1706_v62  ;;  %v1728_v8 = vand.u32 4294901760, %v175_v58  ;;  %1176 = vmatpush3.msra.mxu0 %v1700_v57  ;;  %v190_v47 = vld [vmem:[#allocation2 + $0xb8] sm:$0xff] }
  0x33   : > { %1206 = vmatprep.subr.mxu1 %v442_v50  ;;  %v2187_v12 = vand.u32 4294901760, %v1709_v63  ;;  %v2186_v13 = vand.u32 4294901760, %v1712_v0  ;;  %v1734_v14 = vsub.f32 %v176_v52, %v1714_v1  ;;  %v1737_v31 = vsub.f32 %v191_v53, %v1716_v2  ;;  %1177 = vmatprep.subr.mxu0 %v1702_v60  ;;  %v189_v53 = vld [vmem:[#allocation2 + $0xb0] sm:$0xff]  ;;  %p1469_p0 = pnand %p1468_p13, %p1462_p10 }
  0x34   : > { %1207 = vmatpush3.msra.mxu1 %v330_v54  ;;  %v2184_v32 = vand.u32 4294901760, %v1720_v3  ;;  %v2182_v35 = vand.u32 4294901760, %v1723_v6  ;;  %v2181_v36 = vand.u32 4294901760, %v1726_v7  ;;  %v1744_v37 = vsub.f32 %v175_v58, %v1728_v8  ;;  %1178 = vmatpush3.msra.mxu0 %v1704_v61  ;;  %v173_v54 = vld [vmem:[#allocation2 + $0x30] sm:$0xff] }
  0x35   : > { %2245 = vst [vmem:[#allocation8_spill] sm:$0xff] %v1737_v31  ;;  %1208 = vmatprep.subr.mxu1 %v449_v55  ;;  %v455_v39 = vsub.f32 %v1709_v63, %v2187_v12  ;;  %v343_v40 = vsub.f32 %v1712_v0, %v2186_v13  ;;  %v2183_v41 = vand.u32 4294901760, %v1734_v14  ;;  %v2185_v42 = vand.u32 4294901760, %v1737_v31  ;;  %1179 = vmatprep.subr.mxu0 %v1706_v62  ;;  %v188_v55 = vld [vmem:[#allocation2 + $0xa8] sm:$0xff]  ;;  %v171_v12 = vld [vmem:[#allocation2 + $0x20] sm:$0xff] }
  0x36   : > { %2246 = vst [vmem:[#allocation9_spill] sm:$0xff] %v1744_v37  ;;  %1209 = vmatpush3.msra.mxu1 %v337_v59  ;;  %v462_v43 = vsub.f32 %v1720_v3, %v2184_v32  ;;  %v350_v44 = vsub.f32 %v1723_v6, %v2182_v35  ;;  %v469_v45 = vsub.f32 %v1726_v7, %v2181_v36  ;;  %v2189_v46 = vand.u32 4294901760, %v1744_v37  ;;  %v187_v35 = vld [vmem:[#allocation2 + $0xa0] sm:$0xff] }
  0x37   : > { %1180 = vmatpush3.msra.mxu0 %v1714_v1  ;;  %v456_v49 = vand.u32 4294901760, %v455_v39  ;;  %v344_v50 = vand.u32 4294901760, %v343_v40  ;;  %v357_v51 = vsub.f32 %v1734_v14, %v2183_v41  ;;  %v476_v52 = vsub.f32 %v1737_v31, %v2185_v42  ;;  %v172_v40 = vld [vmem:[#allocation2 + $0x28] sm:$0xff] }
  0x38   : > { %1181 = vmatprep.subr.mxu0 %v1716_v2  ;;  %v463_v58 = vand.u32 4294901760, %v462_v43  ;;  %v351_v59 = vand.u32 4294901760, %v350_v44  ;;  %v470_v36 = vand.u32 4294901760, %v469_v45  ;;  %v364_v39 = vsub.f32 %v1744_v37, %v2189_v46  ;;  %v167_v37 = vld [vmem:[#allocation2] sm:$0xff] }
  0x39   : > { %1182 = vmatpush3.msra.mxu0 %v1728_v8  ;;  %1210 = vmatprep.subr.mxu1 %v456_v49  ;;  %v358_v41 = vand.u32 4294901760, %v357_v51  ;;  %v477_v32 = vand.u32 4294901760, %v476_v52  ;;  %v1778_v42 = vand.u32 4294901760, %v190_v47  ;;  %v1780_v13 = vand.u32 4294901760, %v174_v48 }
  0x3a   : > { %1211 = vmatpush3.msra.mxu1 %v344_v50  ;;  %v365_v43 = vand.u32 4294901760, %v364_v39  ;;  %v1782_v44 = vand.u32 4294901760, %v189_v53  ;;  %v1784_v45 = vand.u32 4294901760, %v173_v54  ;;  %v1786_v38 = vand.u32 4294901760, %v188_v55 }
  0x3b   : > { %1212 = vmatprep.subr.mxu1 %v463_v58  ;;  %v1789_v46 = vsub.f32 %v190_v47, %v1778_v42  ;;  %v1792_v49 = vsub.f32 %v174_v48, %v1780_v13  ;;  %v1794_v51 = vand.u32 4294901760, %v172_v40  ;;  %v1796_v52 = vand.u32 4294901760, %v187_v35  ;;  %1183 = vmatprep.subr.mxu0 %v1778_v42 }
  0x3c   : > { %1213 = vmatpush3.msra.mxu1 %v351_v59  ;;  %v1800_v50 = vsub.f32 %v189_v53, %v1782_v44  ;;  %v1803_v39 = vsub.f32 %v173_v54, %v1784_v45  ;;  %v1806_v58 = vsub.f32 %v188_v55, %v1786_v38  ;;  %v1808_v47 = vand.u32 4294901760, %v171_v12  ;;  %1184 = vmatpush3.msra.mxu0 %v1780_v13 }
  0x3d   : > { %2247 = vst [vmem:[#allocation10_spill] sm:$0xff] %v1789_v46  ;;  %2248 = vst [vmem:[#allocation11_spill] sm:$0xff] %v1792_v49  ;;  %1214 = vmatprep.subr.mxu1 %v470_v36  ;;  %v2193_v48 = vand.u32 4294901760, %v1789_v46  ;;  %v2194_v34 = vand.u32 4294901760, %v1792_v49  ;;  %v1814_v59 = vsub.f32 %v172_v40, %v1794_v51  ;;  %v1817_v53 = vsub.f32 %v187_v35, %v1796_v52 }
  0x3e   : > { %2249 = vst [vmem:[#allocation12_spill] sm:$0xff] %v1800_v50  ;;  %2250 = vst [vmem:[#allocation13_spill] sm:$0xff] %v1803_v39  ;;  %1185 = vmatprep.subr.mxu0 %v1782_v44  ;;  %1215 = vmatpush3.msra.mxu1 %v358_v41  ;;  %v2198_v54 = vand.u32 4294901760, %v1800_v50  ;;  %v2199_v55 = vand.u32 4294901760, %v1803_v39  ;;  %v2205_v33 = vand.u32 4294901760, %v1806_v58  ;;  %v1824_v36 = vsub.f32 %v171_v12, %v1808_v47 }
  0x3f   : > { %2251 = vst [vmem:[#allocation14_spill] sm:$0xff] %v1806_v58  ;;  %2252 = vst [vmem:[#allocation15_spill] sm:$0xff] %v1814_v59  ;;  %1186 = vmatpush3.msra.mxu0 %v1784_v45  ;;  %1216 = vmatprep.subr.mxu1 %v477_v32  ;;  %v483_v35 = vsub.f32 %v1789_v46, %v2193_v48  ;;  %v371_v41 = vsub.f32 %v1792_v49, %v2194_v34  ;;  %v2212_v40 = vand.u32 4294901760, %v1814_v59  ;;  %v183_v46 = vld [vmem:[#allocation2 + $0x80] sm:$0xff] }
  0x40   : > { %2253 = vst [vmem:[#allocation16_spill] sm:$0xff] %v1817_v53  ;;  %2254 = vst [vmem:[#allocation17_spill] sm:$0xff] %v1824_v36  ;;  %v2215_v29 = vand.u32 4294901760, %v1817_v53  ;;  %1187 = vmatprep.subr.mxu0 %v1786_v38  ;;  %1217 = vmatpush3.msra.mxu1 %v365_v43  ;;  %v490_v12 = vsub.f32 %v1800_v50, %v2198_v54  ;;  %v378_v32 = vsub.f32 %v1803_v39, %v2199_v55  ;;  %v169_v39 = vld [vmem:[#allocation2 + $0x10] sm:$0xff]  ;;  %v184_v50 = vld [vmem:[#allocation2 + $0x88] sm:$0xff] }
  0x41   : > { %v497_v48 = vsub.f32 %v1806_v58, %v2205_v33  ;;  %1188 = vmatpush3.msra.mxu0 %v1794_v51  ;;  %v484_v24 = vand.u32 4294901760, %v483_v35  ;;  %v372_v43 = vand.u32 4294901760, %v371_v41  ;;  %v385_v54 = vsub.f32 %v1814_v59, %v2212_v40  ;;  %v168_v41 = vld [vmem:[#allocation2 + $0x8] sm:$0xff] }
  0x42   : > { %v504_v55 = vsub.f32 %v1817_v53, %v2215_v29  ;;  %1189 = vmatprep.subr.mxu0 %v1796_v52  ;;  %v491_v33 = vand.u32 4294901760, %v490_v12  ;;  %v379_v34 = vand.u32 4294901760, %v378_v32  ;;  %v2255_v49 = vand.u32 4294901760, %v1824_v36 }
  0x43   : > { %v498_v58 = vand.u32 4294901760, %v497_v48  ;;  %1190 = vmatpush3.msra.mxu0 %v1808_v47  ;;  %1218 = vmatprep.subr.mxu1 %v484_v24  ;;  %v386_v40 = vand.u32 4294901760, %v385_v54  ;;  %v1858_v29 = vand.u32 4294901760, %v186_v28  ;;  %v1860_v53 = vand.u32 4294901760, %v170_v27 }
  0x44   : > { %v392_v35 = vsub.f32 %v1824_v36, %v2255_v49  ;;  %v505_v59 = vand.u32 4294901760, %v504_v55  ;;  %1219 = vmatpush3.msra.mxu1 %v372_v43  ;;  %v1862_v32 = vand.u32 4294901760, %v185_v23  ;;  %v1864_v48 = vand.u32 4294901760, %v169_v39 }
  0x45   : > { %2256 = vst [vmem:[#allocation18_spill] sm:$0xff] %v1860_v53  ;;  %v1866_v31 = vand.u32 4294901760, %v184_v50  ;;  %1220 = vmatprep.subr.mxu1 %v491_v33  ;;  %v1869_v49 = vsub.f32 %v186_v28, %v1858_v29  ;;  %v1872_v24 = vsub.f32 %v170_v27, %v1860_v53  ;;  %v1874_v54 = vand.u32 4294901760, %v168_v41  ;;  %1191 = vmatprep.subr.mxu0 %v1858_v29 }
  0x46   : > { %v393_v12 = vand.u32 4294901760, %v392_v35  ;;  %v1876_v55 = vand.u32 4294901760, %v183_v46  ;;  %1221 = vmatpush3.msra.mxu1 %v379_v34  ;;  %v1880_v43 = vsub.f32 %v185_v23, %v1862_v32  ;;  %v1883_v35 = vsub.f32 %v169_v39, %v1864_v48  ;;  %1192 = vmatpush3.msra.mxu0 %v1860_v53 }
  0x47   : > { %2257 = vst [vmem:[#allocation19_spill] sm:$0xff] %v1869_v49  ;;  %2258 = vst [vmem:[#allocation20_spill] sm:$0xff] %v1872_v24  ;;  %v1886_v33 = vsub.f32 %v184_v50, %v1866_v31  ;;  %v1888_v28 = vand.u32 4294901760, %v167_v37  ;;  %1222 = vmatprep.subr.mxu1 %v498_v58  ;;  %v2226_v27 = vand.u32 4294901760, %v1869_v49  ;;  %v2229_v36 = vand.u32 4294901760, %v1872_v24  ;;  %1193 = vmatprep.subr.mxu0 %v1862_v32 }
  0x48   : > { %2259 = vst [vmem:[#allocation21_spill] sm:$0xff] %v1880_v43  ;;  %2260 = vst [vmem:[#allocation22_spill] sm:$0xff] %v1883_v35  ;;  %v1894_v34 = vsub.f32 %v168_v41, %v1874_v54  ;;  %v1897_v23 = vsub.f32 %v183_v46, %v1876_v55  ;;  %1223 = vmatpush3.msra.mxu1 %v386_v40  ;;  %v2232_v50 = vand.u32 4294901760, %v1880_v43  ;;  %1194 = vmatpush3.msra.mxu0 %v1864_v48 }
  0x49   : > { %v1904_v58 = vsub.f32 %v167_v37, %v1888_v28  ;;  %1224 = vmatprep.subr.mxu1 %v505_v59  ;;  %v511_v46 = vsub.f32 %v1869_v49, %v2226_v27  ;;  %v399_v40 = vsub.f32 %v1872_v24, %v2229_v36  ;;  %1195 = vmatprep.subr.mxu0 %v1866_v31  ;;  %v2261_v59 = vand.u32 4294901760, %v1883_v35 }
  0x4a   : > { %1225 = vmatpush3.msra.mxu1 %v393_v12  ;;  %v518_v37 = vsub.f32 %v1880_v43, %v2232_v50  ;;  %v2262_v27 = vand.u32 4294901760, %v1886_v33  ;;  %1196 = vmatpush3.msra.mxu0 %v1874_v54  ;;  %v2263_v12 = vand.u32 4294901760, %v1894_v34  ;;  %v2264_v50 = vand.u32 4294901760, %v1897_v23 }
  0x4b   : > { %v406_v53 = vsub.f32 %v1883_v35, %v2261_v59  ;;  %v2237_v36 = vand.u32 4294901760, %v1904_v58  ;;  %v512_v39 = vand.u32 4294901760, %v511_v46  ;;  %v400_v41 = vand.u32 4294901760, %v399_v40  ;;  %1197 = vmatprep.subr.mxu0 %v1876_v55 }
  0x4c   : > { %v525_v49 = vsub.f32 %v1886_v33, %v2262_v27  ;;  %v413_v24 = vsub.f32 %v1894_v34, %v2263_v12  ;;  %v532_v43 = vsub.f32 %v1897_v23, %v2264_v50  ;;  %v519_v59 = vand.u32 4294901760, %v518_v37  ;;  %1198 = vmatpush3.msra.mxu0 %v1888_v28 }
  0x4d   : > { %v407_v35 = vand.u32 4294901760, %v406_v53  ;;  %v420_v27 = vsub.f32 %v1904_v58, %v2237_v36  ;;  %1226 = vmatprep.subr.mxu1 %v512_v39  ;;  %1237 = vmatprep.subr.mxu0 %v1629_v15  ;;  %v155_v53 = vlaneseq  ;;  %v2274_v36 = vld [vmem:[#allocation15_spill] sm:$0xff] }
  0x4e   : > { %v526_v46 = vand.u32 4294901760, %v525_v49  ;;  %1227 = vmatpush3.msra.mxu1 %v400_v41  ;;  %v414_v40 = vand.u32 4294901760, %v413_v24  ;;  %v533_v12 = vand.u32 4294901760, %v532_v43  ;;  %v1529_v24 = vmov 0.0  }
  0x4f   : > { %1228 = vmatprep.subr.mxu1 %v519_v59  ;;  %v421_v50 = vand.u32 4294901760, %v420_v27  ;;  %v1940_v37 = vand.u32 127, %v155_v53  ;;  %v2238_v41 = vmov 1.0  }
  0x50   : > { %1229 = vmatpush3.msra.mxu1 %v407_v35 }
  0x51   : > { %1230 = vmatprep.subr.mxu1 %v526_v46  ;;  %2265 = vst [vmem:[#allocation23_spill] sm:$0xff] %v1940_v37  ;;  %v1943_v39 = vadd.s32 128, %v1940_v37 }
  0x52   : > { %1231 = vmatpush3.msra.mxu1 %v414_v40 }
  0x53   : > { %1232 = vmatprep.subr.mxu1 %v533_v12 }
  0x54   : > { %1233 = vmatpush3.msra.mxu1 %v421_v50 }
  0x55   : > { %1272 = vmatprep.subr.mxu1 %v1618_v4 }
  0xa6   : > { %v1945_v49 = vpop.permute.xlu0 %159 }
  0xa7   : > { %vm161_vm0 = vcmp.eq.s32.totalorder %v1945_v49, %v1940_v37  ;;  %vm162_vm1 = vcmp.eq.s32.totalorder %v1945_v49, %v1943_v39  ;;  %v2276_v37 = vld [vmem:[#allocation17_spill] sm:$0xff] }
  0xa8   : > { %v1155_v43 = vsel %vm161_vm0, 1.0, %v1529_v24  ;;  %v1156_v35 = vsel %vm162_vm1, 1.0, %v1529_v24  ;;  %1157 = vmatprep.mubr.msk.f32.mxu1 %vm162_vm1, %v2238_v41 }
  0xa9   : > { %v296_v59 = vsub.f32 %v1156_v35, %v1156_v35  ;;  %v1961_v27 = vsub.f32 %v1155_v43, %v1155_v43  ;;  %1158 = vmatmul.mubr.msk.f32.vlgmr.msra.gmra.mxu1 %vm161_vm0, %v2238_v41  ;;  %v2266_v43 = vld [vmem:[#allocation8_spill] sm:$0xff]  ;;  %v2267_v35 = vld [vmem:[#allocation9_spill] sm:$0xff] }
  0xaa   : > { %1273 = vmatpush3.msra.mxu1 %v1620_v5  ;;  %v2275_v41 = vld [vmem:[#allocation16_spill] sm:$0xff] }
  0xab   : > { %1274 = vmatprep.subr.mxu1 %v1622_v9  ;;  %v297_v46 = vand.u32 4294901760, %v296_v59  ;;  %v303_v40 = vand.u32 4294901760, %v1961_v27 }
  0xac   : > { %1275 = vmatpush3.msra.mxu1 %v1624_v10 }
  0xad   : > { %1276 = vmatprep.subr.mxu1 %v1626_v11  ;;  %780 = vmatprep.mubr.f32.mxu1 %v297_v46  ;;  %v298_v12 = vsub.f32 %v296_v59, %v297_v46  ;;  %v304_v50 = vsub.f32 %v1961_v27, %v303_v40  ;;  %v2269_v46 = vld [vmem:[#allocation18_spill] sm:$0xff] }
  0xae   : > { %1277 = vmatpush3.msra.mxu1 %v1634_v17 }
  0xaf   : > { %1278 = vmatprep.subr.mxu1 %v1636_v18  ;;  %v299_v53 = vand.u32 4294901760, %v298_v12  ;;  %v305_v24 = vand.u32 4294901760, %v304_v50  ;;  %v2270_v12 = vld [vmem:[#allocation11_spill] sm:$0xff]  ;;  %v2271_v50 = vld [vmem:[#allocation12_spill] sm:$0xff] }
  0xb0   : > { %1279 = vmatpush3.msra.mxu1 %v1648_v22 }
  0xb1   : > { %1280 = vmatprep.subr.mxu1 %v1698_v56  ;;  %300 = vmatprep.mubr.f32.mxu0 %v299_v53  ;;  %v2272_v53 = vld [vmem:[#allocation13_spill] sm:$0xff] }
  0xb2   : > { %1281 = vmatpush3.msra.mxu1 %v1700_v57  ;;  %306 = vmatmul.mubr.f32.vlgmr.msra.gmra.mxu0 %v305_v24  ;;  %v2273_v24 = vld [vmem:[#allocation14_spill] sm:$0xff] }
  0xb3   : > { %1238 = vmatpush3.msra.mxu0 %v1632_v16  ;;  %1282 = vmatprep.subr.mxu1 %v1702_v60 }
  0xb4   : > { %1239 = vmatprep.subr.mxu0 %v1640_v19  ;;  %673 = vmatprep.mubr.f32.mxu0 %v296_v59  ;;  %v2268_v59 = vld [vmem:[#allocation10_spill] sm:$0xff] }
  0xb5   : > { %1283 = vmatpush3.msra.mxu1 %v1704_v61  ;;  %1240 = vmatpush3.msra.mxu0 %v1643_v20 }
  0xb6   : > { %1284 = vmatprep.subr.mxu1 %v1706_v62  ;;  %1241 = vmatprep.subr.mxu0 %v1646_v21 }
  0xb7   : > { %1285 = vmatpush3.msra.mxu1 %v1714_v1  ;;  %1242 = vmatpush3.msra.mxu0 %v1654_v25 }
  0xb8   : > { %1286 = vmatprep.subr.mxu1 %v1716_v2  ;;  %1243 = vmatprep.subr.mxu0 %v1657_v26 }
  0xb9   : > { %1287 = vmatpush3.msra.mxu1 %v1728_v8  ;;  %1244 = vmatpush3.msra.mxu0 %v1664_v30 }
  0xba   : > { %1288 = vmatprep.subr.mxu1 %v1778_v42  ;;  %1245 = vmatprep.subr.mxu0 %v1709_v63 }
  0xbb   : > { %1289 = vmatpush3.msra.mxu1 %v1780_v13  ;;  %1246 = vmatpush3.msra.mxu0 %v1712_v0 }
  0xbc   : > { %1290 = vmatprep.subr.mxu1 %v1782_v44  ;;  %1247 = vmatprep.subr.mxu0 %v1720_v3 }
  0xbd   : > { %1291 = vmatpush3.msra.mxu1 %v1784_v45  ;;  %1248 = vmatpush3.msra.mxu0 %v1723_v6 }
  0xbe   : > { %1292 = vmatprep.subr.mxu1 %v1786_v38  ;;  %1249 = vmatprep.subr.mxu0 %v1726_v7 }
  0xbf   : > { %1293 = vmatpush3.msra.mxu1 %v1794_v51  ;;  %1250 = vmatpush3.msra.mxu0 %v1734_v14 }
  0xc0   : > { %1294 = vmatprep.subr.mxu1 %v1796_v52  ;;  %1251 = vmatprep.subr.mxu0 %v2266_v43 }
  0xc1   : > { %1295 = vmatpush3.msra.mxu1 %v1808_v47  ;;  %1252 = vmatpush3.msra.mxu0 %v2267_v35 }
  0xc2   : > { %1296 = vmatprep.subr.mxu1 %v1858_v29  ;;  %1253 = vmatprep.subr.mxu0 %v2268_v59 }
  0xc3   : > { %1297 = vmatpush3.msra.mxu1 %v2269_v46  ;;  %1254 = vmatpush3.msra.mxu0 %v2270_v12 }
  0xc4   : > { %1298 = vmatprep.subr.mxu1 %v1862_v32  ;;  %1255 = vmatprep.subr.mxu0 %v2271_v50 }
  0xc5   : > { %1299 = vmatpush3.msra.mxu1 %v1864_v48  ;;  %1256 = vmatpush3.msra.mxu0 %v2272_v53  ;;  %v2277_v53 = vld [vmem:[#allocation19_spill] sm:$0xff] }
  0xc6   : > { %1300 = vmatprep.subr.mxu1 %v1866_v31  ;;  %1257 = vmatprep.subr.mxu0 %v2273_v24  ;;  %v2278_v24 = vmov 1.0  }
  0xc7   : > { %1301 = vmatpush3.msra.mxu1 %v1874_v54  ;;  %1258 = vmatpush3.msra.mxu0 %v2274_v36  ;;  %v2279_v36 = vld [vmem:[#allocation20_spill] sm:$0xff] }
  0xc8   : > { %1302 = vmatprep.subr.mxu1 %v1876_v55  ;;  %1259 = vmatprep.subr.mxu0 %v2275_v41  ;;  %v2280_v41 = vld [vmem:[#allocation21_spill] sm:$0xff] }
  0xc9   : > { %1303 = vmatpush3.msra.mxu1 %v1888_v28  ;;  %1260 = vmatpush3.msra.mxu0 %v2276_v37 }
  0xca   : > { %784 = vmatmul.mubr.f32.vlgmr.msra.gmra.mxu1 %v303_v40  ;;  %1342 = vmatprep.subr.mxu1 %v1618_v4  ;;  %v2281_v40 = vld [vmem:[#allocation22_spill] sm:$0xff]  ;;  %v2282_v4 = vand.u32 4294901760, %v1629_v15  ;;  %v2287_v15 = vand.u32 4294901760, %v1654_v25  ;;  %v2295_v25 = vand.u32 4294901760, %v1734_v14 }
  0xcb   : > { %1261 = vmatprep.subr.mxu0 %v2277_v53  ;;  %1343 = vmatpush3.msra.mxu1 %v1620_v5  ;;  %v2283_v5 = vand.u32 4294901760, %v1632_v16  ;;  %v2288_v16 = vand.u32 4294901760, %v1657_v26  ;;  %v2296_v26 = vand.u32 4294901760, %v2266_v43  ;;  %v2314_v14 = vand.u32 4294901760, %v2281_v40 }
  0xcc   : > { %1161 = vmatprep.mubr.msk.f32.mxu1 %vm162_vm1, %v2278_v24  ;;  %1262 = vmatpush3.msra.mxu0 %v2279_v36 }
  0xcd   : > { %1344 = vmatprep.subr.mxu1 %v1622_v9  ;;  %1263 = vmatprep.subr.mxu0 %v2280_v41  ;;  %v2284_v9 = vand.u32 4294901760, %v1640_v19  ;;  %v2291_v19 = vand.u32 4294901760, %v1712_v0 }
  0xce   : > { %1345 = vmatpush3.msra.mxu1 %v1624_v10  ;;  %1264 = vmatpush3.msra.mxu0 %v2281_v40  ;;  %v2285_v10 = vand.u32 4294901760, %v1643_v20  ;;  %v2292_v20 = vand.u32 4294901760, %v1720_v3  ;;  %v2309_v3 = vand.u32 4294901760, %v2276_v37 }
  0xcf   : > { %1346 = vmatprep.subr.mxu1 %v1626_v11  ;;  %1265 = vmatprep.subr.mxu0 %v1886_v33  ;;  %v2286_v11 = vand.u32 4294901760, %v1646_v21  ;;  %v2293_v21 = vand.u32 4294901760, %v1723_v6 }
  0xd0   : > { %1347 = vmatpush3.msra.mxu1 %v1634_v17  ;;  %1266 = vmatpush3.msra.mxu0 %v1894_v34  ;;  %v2289_v17 = vand.u32 4294901760, %v1664_v30  ;;  %v2297_v30 = vand.u32 4294901760, %v2267_v35 }
  0xd1   : > { %1348 = vmatprep.subr.mxu1 %v1636_v18  ;;  %1267 = vmatprep.subr.mxu0 %v1897_v23  ;;  %v2290_v18 = vand.u32 4294901760, %v1709_v63  ;;  %v2305_v63 = vld [vmem:[#allocation15_spill] sm:$0xff] }
  0xd2   : > { %1349 = vmatpush3.msra.mxu1 %v1648_v22  ;;  %1268 = vmatpush3.msra.mxu0 %v1904_v58  ;;  %v2294_v22 = vand.u32 4294901760, %v1726_v7  ;;  %v2306_v0 = vand.u32 4294901760, %v2305_v63  ;;  %v2311_v7 = vand.u32 4294901760, %v2277_v53 }
  0xd3   : > { %1350 = vmatprep.subr.mxu1 %v1698_v56  ;;  %676 = vmatmul.mubr.f32.vlgmr.msra.gmra.mxu0 %v1961_v27  ;;  %v2299_v56 = vand.u32 4294901760, %v2270_v12 }
  0xd4   : > { %1307 = vmatprep.subr.mxu0 %v2282_v4  ;;  %1351 = vmatpush3.msra.mxu1 %v1700_v57  ;;  %v2300_v57 = vand.u32 4294901760, %v2271_v50 }
  0xd5   : > { %1308 = vmatpush3.msra.mxu0 %v2283_v5  ;;  %1159 = vmatprep.mubr.msk.f32.mxu0 %vm162_vm1, %v2278_v24 }
  0xd6   : > { %1352 = vmatprep.subr.mxu1 %v1702_v60  ;;  %1309 = vmatprep.subr.mxu0 %v2284_v9  ;;  %v2301_v60 = vld [vmem:[#allocation13_spill] sm:$0xff] }
  0xd7   : > { %1353 = vmatpush3.msra.mxu1 %v1704_v61  ;;  %1310 = vmatpush3.msra.mxu0 %v2285_v10  ;;  %v2302_v61 = vand.u32 4294901760, %v2301_v60 }
  0xd8   : > { %1354 = vmatprep.subr.mxu1 %v1706_v62  ;;  %1311 = vmatprep.subr.mxu0 %v2286_v11 }
  0xd9   : > { %1355 = vmatpush3.msra.mxu1 %v1714_v1  ;;  %1312 = vmatpush3.msra.mxu0 %v2287_v15  ;;  %v2307_v1 = vld [vmem:[#allocation16_spill] sm:$0xff] }
  0xda   : > { %1356 = vmatprep.subr.mxu1 %v1716_v2  ;;  %1313 = vmatprep.subr.mxu0 %v2288_v16  ;;  %v2308_v2 = vand.u32 4294901760, %v2307_v1 }
  0xdb   : > { %1357 = vmatpush3.msra.mxu1 %v1728_v8  ;;  %1314 = vmatpush3.msra.mxu0 %v2289_v17  ;;  %v2312_v8 = vand.u32 4294901760, %v2279_v36 }
  0xdc   : > { %1358 = vmatprep.subr.mxu1 %v1778_v42  ;;  %1315 = vmatprep.subr.mxu0 %v2290_v18  ;;  %v2316_v42 = vand.u32 4294901760, %v1894_v34 }
  0xdd   : > { %1359 = vmatpush3.msra.mxu1 %v1780_v13  ;;  %1316 = vmatpush3.msra.mxu0 %v2291_v19  ;;  %v2313_v13 = vand.u32 4294901760, %v2280_v41 }
  0xde   : > { %1360 = vmatprep.subr.mxu1 %v1782_v44  ;;  %1317 = vmatprep.subr.mxu0 %v2292_v20  ;;  %v2317_v44 = vand.u32 4294901760, %v1897_v23 }
  0xdf   : > { %1361 = vmatpush3.msra.mxu1 %v1784_v45  ;;  %1318 = vmatpush3.msra.mxu0 %v2293_v21  ;;  %v2318_v45 = vand.u32 4294901760, %v1904_v58 }
  0xe0   : > { %1362 = vmatprep.subr.mxu1 %v1786_v38  ;;  %1319 = vmatprep.subr.mxu0 %v2294_v22  ;;  %v2298_v38 = vand.u32 4294901760, %v2268_v59 }
  0xe1   : > { %1363 = vmatpush3.msra.mxu1 %v1794_v51  ;;  %1320 = vmatpush3.msra.mxu0 %v2295_v25 }
  0xe2   : > { %1364 = vmatprep.subr.mxu1 %v1796_v52  ;;  %1321 = vmatprep.subr.mxu0 %v2296_v26 }
  0xe3   : > { %1365 = vmatpush3.msra.mxu1 %v1808_v47  ;;  %1322 = vmatpush3.msra.mxu0 %v2297_v30 }
  0xe4   : > { %1366 = vmatprep.subr.mxu1 %v1858_v29  ;;  %1323 = vmatprep.subr.mxu0 %v2298_v38  ;;  %v2303_v29 = vld [vmem:[#allocation14_spill] sm:$0xff] }
  0xe5   : > { %1367 = vmatpush3.msra.mxu1 %v2269_v46  ;;  %1324 = vmatpush3.msra.mxu0 %v2299_v56  ;;  %v2304_v62 = vand.u32 4294901760, %v2303_v29 }
  0xe6   : > { %1368 = vmatprep.subr.mxu1 %v1862_v32  ;;  %1325 = vmatprep.subr.mxu0 %v2300_v57 }
  0xe7   : > { %1369 = vmatpush3.msra.mxu1 %v1864_v48  ;;  %1326 = vmatpush3.msra.mxu0 %v2302_v61 }
  0xe8   : > { %1370 = vmatprep.subr.mxu1 %v1866_v31  ;;  %1327 = vmatprep.subr.mxu0 %v2304_v62  ;;  %v2315_v31 = vand.u32 4294901760, %v1886_v33 }
  0xe9   : > { %1371 = vmatpush3.msra.mxu1 %v1874_v54  ;;  %1328 = vmatpush3.msra.mxu0 %v2306_v0 }
  0xea   : > { %1372 = vmatprep.subr.mxu1 %v1876_v55  ;;  %1329 = vmatprep.subr.mxu0 %v2308_v2 }
  0xeb   : > { %1373 = vmatpush3.msra.mxu1 %v1888_v28  ;;  %1330 = vmatpush3.msra.mxu0 %v2309_v3 }
  0xec   : > { %1162 = vmatmul.mubr.msk.f32.vlgmr.msra.gmra.mxu1 %vm161_vm0, %v2278_v24  ;;  %1331 = vmatprep.subr.mxu0 %v2311_v7 }
  0xed   : > { %1332 = vmatpush3.msra.mxu0 %v2312_v8 }
  0xee   : > { %1333 = vmatprep.subr.mxu0 %v2313_v13 }
  0xef   : > { %1334 = vmatpush3.msra.mxu0 %v2314_v14 }
  0xf0   : > { %1335 = vmatprep.subr.mxu0 %v2315_v31 }
  0xf1   : > { %1336 = vmatpush3.msra.mxu0 %v2316_v42 }
  0xf2   : > { %1337 = vmatprep.subr.mxu0 %v2317_v44 }
  0xf3   : > { %1338 = vmatpush3.msra.mxu0 %v2318_v45 }
  0xf4   : > { %1160 = vmatmul.mubr.msk.f32.vlgmr.msra.gmra.mxu0 %vm161_vm0, %v2278_v24 }
 0x169   : > { %v1234_v52 = vpop.f32.mrf.mxu1 }
 0x16b   : > { %v1235_v32 = vpop.f32.mrf.mxu1 }
 0x16c   : > { %v1236_v33 = vadd.f32 %v1235_v32, %v1234_v52 }
 0x172   : > { %v1199_v51 = vpop.f32.mrf.mxu0 }
 0x174   : > { %v1200_v47 = vpop.f32.mrf.mxu0 }
 0x175   : > { %v1201_v55 = vadd.f32 %v1200_v47, %v1199_v51 }
 0x177   : > { %v540_v23 = vadd.f32 %v1236_v33, %v1201_v55 }
 0x18a   : > { %v1304_v48 = vpop.f32.mrf.mxu1 }
 0x18c   : > { %v1305_v34 = vpop.f32.mrf.mxu1 }
 0x18d   : > { %v1306_v49 = vadd.f32 %v1305_v34, %v1304_v48 }
 0x193   : > { %v1269_v36 = vpop.f32.mrf.mxu0 }
 0x195   : > { %v1270_v54 = vpop.f32.mrf.mxu0 }
 0x196   : > { %v1271_v28 = vadd.f32 %v1270_v54, %v1269_v36 }
 0x198   : > { %v678_v37 = vadd.f32 %v1271_v28, %v540_v23 }
 0x19a   : > { %v786_v43 = vadd.f32 %v1306_v49, %v678_v37 }
 0x1ac   : > { %v1374_v58 = vpop.f32.mrf.mxu1 }
 0x1ae   : > { %v1375_v41 = vpop.f32.mrf.mxu1 }
 0x1af   : > { %v1376_v59 = vadd.f32 %v1375_v41, %v1374_v58 }
 0x1b4   : > { %v1339_v39 = vpop.f32.mrf.mxu0 }
 0x1b6   : > { %v1340_v27 = vpop.f32.mrf.mxu0 }
 0x1b7   : > { %v1341_v35 = vadd.f32 %v1340_v27, %v1339_v39 }
 0x1b9   : > { %v954_v46 = vadd.f32 %v1341_v35, %v786_v43 }
 0x1bb   : > { %v1058_v12 = vadd.f32 %v1376_v59, %v954_v46 }
 0x1bd   : > { %1061 = vst [vmem:[%s149_s14] sm:$0xff] %v1058_v12 }
 0x1be   : > { %1472 = shalt.err (!%p1469_p0)
}
 0x1bf   : > { %s1473_s27 = scalar_lea.hbm %s1074_s22, 128  ;;  %s1477_s30 = scalar_lea.hbm %s2180_s2, 256 }
 0x1c0   : > { %p1474_p1 = scmp.ne.s32.totalorder %s1074_s22, %s1473_s27  ;;  %p1478_p4 = scmp.lt.s32.totalorder %s1074_s22, %s2180_s2 }
 0x1c1   : > { %p1479_p7 = scmp.lt.s32.totalorder %s1477_s30, %s1473_s27 }
 0x1c2   : > { %p1475_p2 = pnand %p1474_p1, %p1585_p5 }
 0x1c3   : > { %p1480_p8 = por %p1479_p7, %p1478_p4 }
 0x1c4   : > { %p1476_p3 = pneg %p1475_p2 }
 0x1c6   : > { %p1481_p6 = pnand %p1480_p8, %p1476_p3 }
 0x1c8   : > { %1484 = shalt.err (!%p1481_p6)
}
 0x1c9   : > { %1381 = dma.vmem_to_hbm [thread:$0]  (%p1585_p5), %s1077_s16, 128, %s1074_s22, %s1063_s23  }
 0x1ca PF: > { %p1393_p9 = scmp.ge.s32.totalorder %s1523_s12, 2  ;;  %s1088_s5 = sand.u32 1, %s1511_s9  }
 0x1cb   : > { %p2319_p10 = scmp.ne.s32.totalorder %s2243_s20, 0  ;;  %s1089_s6 = scalar_lea.sflag [#allocation4], %s1088_s5 }
 0x1cd   : > { %p1388_p11 = pnand %p1393_p9, %p2319_p10 }
 0x1cf   : > { %p1389_p12 = pneg %p1388_p11 }
 0x1d1   : > { %1506 = dma.done.wait (%p1389_p12), %s1089_s6, 128  }
 0x1d2   : > { %1508 = vsyncadd (%p1389_p12), %s1089_s6, 4294967168  ;;  %p13_p13 = scmp.ge.s32.totalorder %s1572_s15, 4   ;;  %s2320_s9 = smov %s1515_s10 }
 0x1d3   : > { %s2321_s10 = smov %s1519_s11  ;;  %s2322_s11 = smov %s1583_s18 }
 0x1d4   : > { %s2323_s12 = smov %s1572_s15  ;;  %15 = sbr.rel (!%p13_p13) target bundleno = 4 (0x4), region = 68 }
 0x1d9   :  { %1094 = vsyncpa [#allocation3], 1 }
 0x1da   :  { %1096 = vsyncpa [#allocation3 + $0x1], 1 }
 0x1db   :  { %1097 = vsyncpa [#allocation4], 1 }
 0x1dc   :  { %1099 = vsyncpa [#allocation4 + $0x1], 1 }

// kernel: tpu_custom_call.1
= control target key start
LH: loop header
LB: loop body
LE: loop exit
PB: predicated region body
PF: predicated region fallthrough
CT: control target
= control target key end

     0   :  { %7 = vsyncpa [#allocation3], 0  ;;  %s2178_s0 = inlined_call_operand.vmem [shape: s32[16,1], index: 0, kind: input, shape index: {}]   ;;  %s2179_s1 = inlined_call_operand.hbm [shape: f32[256,128], index: 1, kind: input, shape index: {}]   ;;  %s2180_s2 = inlined_call_operand.hbm [shape: f32[16,128], index: 2, kind: output, shape index: {}]  }
   0x1   :  { %8 = vsyncpa [#allocation4], 0 }
   0x2   :  { %10 = vsyncpa [#allocation4 + $0x1], 0  ;;  %s1547_s9 = smov 0   ;;  %s1549_s10 = smov 0  }
   0x3   :  { %s1551_s11 = smov 0   ;;  %s1553_s12 = smov 0  }
   0x4 LB: > { %s1568_s13 = sadd.s32 4294967295, %s1523_s12   ;;  %s1147_s14 = sadd.s32 4294967294, %s1523_s12   ;;  %s1523_s12 = sphi %s1553_s12, %s2323_s12   ;;  %s1519_s11 = sphi %s1551_s11, %s2322_s11   ;;  %s1515_s10 = sphi %s1549_s10, %s2321_s10   ;;  %s1511_s9 = sphi %s1547_s9, %s2320_s9  }
   0x5   : > { %s1572_s15 = sadd.s32 1, %s1523_s12   ;;  %s70_s16 = sadd.s32 1, %s1519_s11 }
   0x6   : > { %s67_s17 = ssub.s32 %s1523_s12, %s1572_s15  ;;  %p80_p0 = scmp.ne.s32.totalorder %s1519_s11, %s1515_s10 }
   0x7   : > { %p68_p1 = scmp.eq.s32.totalorder %s67_s17, 0  ;;  %p81_p2 = scmp.eq.s32.totalorder %s1568_s13, 1 }
   0x8   : > { %p86_p3 = scmp.ne.s32.totalorder %s1515_s10, %s1511_s9  ;;  %p87_p4 = scmp.eq.s32.totalorder %s1147_s14, 1 }
   0x9   : > { %s1583_s18 = scalar_select %p68_p1, %s1519_s11, %s70_s16  }
   0xa   : > { %p1585_p5 = por %p81_p2, %p80_p0  ;;  %p1589_p6 = por %p87_p4, %p86_p3 }
   0xb   : > { %p1148_p7 = scmp.ge.s32.totalorder %s1523_s12, 1  ;;  %p94_p8 = scmp.lt.s32.totalorder %s1523_s12, 3 }
   0xc   : > { %s2243_s20 = scalar_select %p1589_p6, 1, 0 }
   0xd   : > { %p1391_p9 = scmp.eq.s32.totalorder %s1568_s13, 0  ;;  %p1596_p10 = pnand %p1148_p7, %p94_p8 }
   0xe   : > { %s1525_s22 = smov [#allocation2]  }
   0xf   : > { %s106_s23 = sshll.u32 %s1525_s22, 4  ;;  %p1383_p11 = pneg %p1596_p10  ;;  %s107_s23 = int_to_ptr.vmem [resolvable:$true] %s106_s23 }
  0x10   : > { %s1444_s24 = scalar_lea.vmem %s107_s23, 4096  ;;  %p1452_p3 = scmp.lt.s32.totalorder %s107_s23, %s107_s23 }
  0x11   : > { %p1384_p12 = pnand %p1391_p9, %p1383_p11  ;;  %p1445_p0 = scmp.ne.s32.totalorder %s107_s23, %s1444_s24 }
  0x12   : > { %p1453_p4 = scmp.lt.s32.totalorder %s1444_s24, %s1444_s24 }
  0x13   : > { %p1435_p13 = pneg %p1384_p12 }
  0x14   : > { %p1454_p6 = por %p1453_p4, %p1452_p3 }
  0x15   : > { %p1447_p1 = pnand %p1445_p0, %p1435_p13 }
  0x17   : > { %p1448_p2 = pneg %p1447_p1 }
  0x19   : > { %p1455_p7 = pnand %p1454_p6, %p1448_p2 }
  0x1b   : > { %1458 = shalt.err (!%p1455_p7)
}
  0x1c   : > { %s1526_s25 = smov 128   ;;  %s1527_s26 = smov 8  }
  0x1d   : > { %1386 = dma.hbm_to_vmem [thread:$0]  (!%p1384_p12), %s2179_s1, 4096, %s107_s23, [#allocation3], %s1526_s25, %s1526_s25, %s1527_s26  }
  0x1e   : > { %129 = sbr.rel (%p1596_p10) target bundleno = 458 (0x1ca), region = 28 }
  0x23   : > { %1502 = dma.done.wait (%p1391_p9), [#allocation3], 4096  }
  0x24   : > { %1504 = vsyncadd (%p1391_p9), [#allocation3], 4294963200  ;;  %p150_p8 = scmp.lt.s32.totalorder %s1568_s13, 1  ;;  %v1528_v0 = vmov 0   ;;  %v198_v2 = vld [vmem:[#allocation2 + $0xf8] sm:$0xff]  ;;  %v197_v6 = vld [vmem:[#allocation2 + $0xf0] sm:$0xff] }
  0x25   : > { %1432 = vset.pattern.permute.xlu0 %v1528_v0  ;;  %v182_v3 = vld [vmem:[#allocation2 + $0x78] sm:$0xff]  ;;  %v1618_v4 = vand.u32 4294901760, %v198_v2  ;;  %v181_v7 = vld [vmem:[#allocation2 + $0x70] sm:$0xff]  ;;  %v196_v8 = vld [vmem:[#allocation2 + $0xe8] sm:$0xff]  ;;  %v1622_v9 = vand.u32 4294901760, %v197_v6  ;;  %s147_s6 = sand.u32 1, %s1515_s10  }
  0x26   : > { %s151_s29 = scalar_select %p150_p8, %s1568_s13, 1  ;;  %v1620_v5 = vand.u32 4294901760, %v182_v3  ;;  %v1624_v10 = vand.u32 4294901760, %v181_v7  ;;  %v1626_v11 = vand.u32 4294901760, %v196_v8  ;;  %v180_v12 = vld [vmem:[#allocation2 + $0x68] sm:$0xff]  ;;  %v195_v13 = vld [vmem:[#allocation2 + $0xe0] sm:$0xff] }
  0x27   : > { %v179_v14 = vld [vmem:[#allocation2 + $0x60] sm:$0xff]  ;;  %v1629_v15 = vsub.f32 %v198_v2, %v1618_v4  ;;  %v1634_v17 = vand.u32 4294901760, %v180_v12  ;;  %v1636_v18 = vand.u32 4294901760, %v195_v13  ;;  %1167 = vmatprep.subr.mxu0 %v1618_v4  ;;  %v1640_v19 = vsub.f32 %v197_v6, %v1622_v9  ;;  %v194_v39 = vld [vmem:[#allocation2 + $0xd8] sm:$0xff]  ;;  %v193_v45 = vld [vmem:[#allocation2 + $0xd0] sm:$0xff]  ;;  %s1153_s7 = sshll.u32 %s147_s6, 3 }
  0x28   : > { %s1154_s30 = sshll.u32 %s151_s29, 3  ;;  %v1632_v16 = vsub.f32 %v182_v3, %v1620_v5  ;;  %v1643_v20 = vsub.f32 %v181_v7, %v1624_v10  ;;  %v1646_v21 = vsub.f32 %v196_v8, %v1626_v11  ;;  %v1648_v22 = vand.u32 4294901760, %v179_v14  ;;  %1168 = vmatpush3.msra.mxu0 %v1620_v5  ;;  %v178_v40 = vld [vmem:[#allocation2 + $0x58] sm:$0xff]  ;;  %v177_v46 = vld [vmem:[#allocation2 + $0x50] sm:$0xff]  ;;  %v192_v47 = vld [vmem:[#allocation2 + $0xc8] sm:$0xff]  ;;  %s1164_s8 = sshll.u32 %s1568_s13, 7 }
  0x29   : > { %s153_s5 = scalar_lea.vmem %s2178_s0, %s1154_s30  ;;  %v2200_v23 = vand.u32 4294901760, %v1629_v15  ;;  %v1654_v25 = vsub.f32 %v180_v12, %v1634_v17  ;;  %v1657_v26 = vsub.f32 %v195_v13, %v1636_v18  ;;  %1169 = vmatprep.subr.mxu0 %v1622_v9  ;;  %v2196_v27 = vand.u32 4294901760, %v1640_v19  ;;  %v176_v52 = vld [vmem:[#allocation2 + $0x48] sm:$0xff]  ;;  %v191_v53 = vld [vmem:[#allocation2 + $0xc0] sm:$0xff]  ;;  %s149_s14 = scalar_lea.vmem [#allocation5], %s1153_s7 }
  0x2a   : > { %v154_v1 = vld [vmem:[%s153_s5] sm:$0xff]  ;;  %v2197_v24 = vand.u32 4294901760, %v1632_v16  ;;  %v2195_v28 = vand.u32 4294901760, %v1643_v20  ;;  %v2192_v29 = vand.u32 4294901760, %v1646_v21  ;;  %v1664_v30 = vsub.f32 %v179_v14, %v1648_v22  ;;  %1170 = vmatpush3.msra.mxu0 %v1624_v10  ;;  %s1076_s16 = sshll.u32 %s149_s14, 4  ;;  %s1074_s22 = scalar_lea.hbm %s2180_s2, %s1164_s8  ;;  %s1077_s16 = int_to_ptr.vmem [resolvable:$true] %s1076_s16 }
  0x2b   : > { %159 = vperm.xlu0 %1432, %v154_v1   ;;  %v427_v31 = vsub.f32 %v1629_v15, %v2200_v23  ;;  %v2191_v33 = vand.u32 4294901760, %v1654_v25  ;;  %v2190_v34 = vand.u32 4294901760, %v1657_v26  ;;  %1171 = vmatprep.subr.mxu0 %v1626_v11  ;;  %v434_v35 = vsub.f32 %v1640_v19, %v2196_v27  ;;  %v175_v58 = vld [vmem:[#allocation2 + $0x40] sm:$0xff]  ;;  %v170_v27 = vld [vmem:[#allocation2 + $0x18] sm:$0xff]  ;;  %v185_v23 = vld [vmem:[#allocation2 + $0x90] sm:$0xff]  ;;  %s1063_s23 = scalar_lea.sflag [#allocation4], %s147_s6 }
  0x2c   : > { %v315_v32 = vsub.f32 %v1632_v16, %v2197_v24  ;;  %v322_v36 = vsub.f32 %v1643_v20, %v2195_v28  ;;  %v441_v37 = vsub.f32 %v1646_v21, %v2192_v29  ;;  %v2188_v38 = vand.u32 4294901760, %v1664_v30  ;;  %1172 = vmatpush3.msra.mxu0 %v1634_v17  ;;  %v186_v28 = vld [vmem:[#allocation2 + $0x98] sm:$0xff]  ;;  %s1459_s24 = scalar_lea.vmem %s1077_s16, 128  ;;  %s1531_s25 = smov [#allocation5]  }
  0x2d   : > { %v428_v41 = vand.u32 4294901760, %v427_v31  ;;  %v329_v43 = vsub.f32 %v1654_v25, %v2191_v33  ;;  %v448_v44 = vsub.f32 %v1657_v26, %v2190_v34  ;;  %1173 = vmatprep.subr.mxu0 %v1636_v18  ;;  %v435_v48 = vand.u32 4294901760, %v434_v35  ;;  %p1460_p6 = scmp.ne.s32.totalorder %s1077_s16, %s1459_s24  ;;  %s1463_s26 = sshll.u32 %s1531_s25, 4  ;;  %s1464_s26 = int_to_ptr.vmem [resolvable:$false] %s1463_s26 }
  0x2e   : > { %v316_v42 = vand.u32 4294901760, %v315_v32  ;;  %v323_v49 = vand.u32 4294901760, %v322_v36  ;;  %v442_v50 = vand.u32 4294901760, %v441_v37  ;;  %v336_v51 = vsub.f32 %v1664_v30, %v2188_v38  ;;  %1174 = vmatpush3.msra.mxu0 %v1648_v22  ;;  %s1465_s13 = scalar_lea.vmem %s1464_s26, 256  ;;  %p1466_p11 = scmp.lt.s32.totalorder %s1077_s16, %s1464_s26 }
  0x2f   : > { %1202 = vmatprep.subr.mxu1 %v428_v41  ;;  %v330_v54 = vand.u32 4294901760, %v329_v43  ;;  %v449_v55 = vand.u32 4294901760, %v448_v44  ;;  %v1698_v56 = vand.u32 4294901760, %v194_v39  ;;  %v1700_v57 = vand.u32 4294901760, %v178_v40  ;;  %p1461_p9 = pnand %p1460_p6, %p1585_p5  ;;  %p1467_p12 = scmp.lt.s32.totalorder %s1465_s13, %s1459_s24 }
  0x30   : > { %1203 = vmatpush3.msra.mxu1 %v316_v42  ;;  %v337_v59 = vand.u32 4294901760, %v336_v51  ;;  %v1702_v60 = vand.u32 4294901760, %v193_v45  ;;  %v1704_v61 = vand.u32 4294901760, %v177_v46  ;;  %v1706_v62 = vand.u32 4294901760, %v192_v47 }
  0x31   : > { %1204 = vmatprep.subr.mxu1 %v435_v48  ;;  %v1709_v63 = vsub.f32 %v194_v39, %v1698_v56  ;;  %v1712_v0 = vsub.f32 %v178_v40, %v1700_v57  ;;  %v1714_v1 = vand.u32 4294901760, %v176_v52  ;;  %v1716_v2 = vand.u32 4294901760, %v191_v53  ;;  %1175 = vmatprep.subr.mxu0 %v1698_v56  ;;  %v174_v48 = vld [vmem:[#allocation2 + $0x38] sm:$0xff]  ;;  %p1462_p10 = pneg %p1461_p9  ;;  %p1468_p13 = por %p1467_p12, %p1466_p11 }
  0x32   : > { %1205 = vmatpush3.msra.mxu1 %v323_v49  ;;  %v1720_v3 = vsub.f32 %v193_v45, %v1702_v60  ;;  %v1723_v6 = vsub.f32 %v177_v46, %v1704_v61  ;;  %v1726_v7 = vsub.f32 %v192_v47, %v1706_v62  ;;  %v1728_v8 = vand.u32 4294901760, %v175_v58  ;;  %1176 = vmatpush3.msra.mxu0 %v1700_v57  ;;  %v190_v47 = vld [vmem:[#allocation2 + $0xb8] sm:$0xff] }
  0x33   : > { %1206 = vmatprep.subr.mxu1 %v442_v50  ;;  %v2187_v12 = vand.u32 4294901760, %v1709_v63  ;;  %v2186_v13 = vand.u32 4294901760, %v1712_v0  ;;  %v1734_v14 = vsub.f32 %v176_v52, %v1714_v1  ;;  %v1737_v31 = vsub.f32 %v191_v53, %v1716_v2  ;;  %1177 = vmatprep.subr.mxu0 %v1702_v60  ;;  %v189_v53 = vld [vmem:[#allocation2 + $0xb0] sm:$0xff]  ;;  %p1469_p0 = pnand %p1468_p13, %p1462_p10 }
  0x34   : > { %1207 = vmatpush3.msra.mxu1 %v330_v54  ;;  %v2184_v32 = vand.u32 4294901760, %v1720_v3  ;;  %v2182_v35 = vand.u32 4294901760, %v1723_v6  ;;  %v2181_v36 = vand.u32 4294901760, %v1726_v7  ;;  %v1744_v37 = vsub.f32 %v175_v58, %v1728_v8  ;;  %1178 = vmatpush3.msra.mxu0 %v1704_v61  ;;  %v173_v54 = vld [vmem:[#allocation2 + $0x30] sm:$0xff] }
  0x35   : > { %2245 = vst [vmem:[#allocation8_spill] sm:$0xff] %v1737_v31  ;;  %1208 = vmatprep.subr.mxu1 %v449_v55  ;;  %v455_v39 = vsub.f32 %v1709_v63, %v2187_v12  ;;  %v343_v40 = vsub.f32 %v1712_v0, %v2186_v13  ;;  %v2183_v41 = vand.u32 4294901760, %v1734_v14  ;;  %v2185_v42 = vand.u32 4294901760, %v1737_v31  ;;  %1179 = vmatprep.subr.mxu0 %v1706_v62  ;;  %v188_v55 = vld [vmem:[#allocation2 + $0xa8] sm:$0xff]  ;;  %v171_v12 = vld [vmem:[#allocation2 + $0x20] sm:$0xff] }
  0x36   : > { %2246 = vst [vmem:[#allocation9_spill] sm:$0xff] %v1744_v37  ;;  %1209 = vmatpush3.msra.mxu1 %v337_v59  ;;  %v462_v43 = vsub.f32 %v1720_v3, %v2184_v32  ;;  %v350_v44 = vsub.f32 %v1723_v6, %v2182_v35  ;;  %v469_v45 = vsub.f32 %v1726_v7, %v2181_v36  ;;  %v2189_v46 = vand.u32 4294901760, %v1744_v37  ;;  %v187_v35 = vld [vmem:[#allocation2 + $0xa0] sm:$0xff] }
  0x37   : > { %1180 = vmatpush3.msra.mxu0 %v1714_v1  ;;  %v456_v49 = vand.u32 4294901760, %v455_v39  ;;  %v344_v50 = vand.u32 4294901760, %v343_v40  ;;  %v357_v51 = vsub.f32 %v1734_v14, %v2183_v41  ;;  %v476_v52 = vsub.f32 %v1737_v31, %v2185_v42  ;;  %v172_v40 = vld [vmem:[#allocation2 + $0x28] sm:$0xff] }
  0x38   : > { %1181 = vmatprep.subr.mxu0 %v1716_v2  ;;  %v463_v58 = vand.u32 4294901760, %v462_v43  ;;  %v351_v59 = vand.u32 4294901760, %v350_v44  ;;  %v470_v36 = vand.u32 4294901760, %v469_v45  ;;  %v364_v39 = vsub.f32 %v1744_v37, %v2189_v46  ;;  %v167_v37 = vld [vmem:[#allocation2] sm:$0xff] }
  0x39   : > { %1182 = vmatpush3.msra.mxu0 %v1728_v8  ;;  %1210 = vmatprep.subr.mxu1 %v456_v49  ;;  %v358_v41 = vand.u32 4294901760, %v357_v51  ;;  %v477_v32 = vand.u32 4294901760, %v476_v52  ;;  %v1778_v42 = vand.u32 4294901760, %v190_v47  ;;  %v1780_v13 = vand.u32 4294901760, %v174_v48 }
  0x3a   : > { %1211 = vmatpush3.msra.mxu1 %v344_v50  ;;  %v365_v43 = vand.u32 4294901760, %v364_v39  ;;  %v1782_v44 = vand.u32 4294901760, %v189_v53  ;;  %v1784_v45 = vand.u32 4294901760, %v173_v54  ;;  %v1786_v38 = vand.u32 4294901760, %v188_v55 }
  0x3b   : > { %1212 = vmatprep.subr.mxu1 %v463_v58  ;;  %v1789_v46 = vsub.f32 %v190_v47, %v1778_v42  ;;  %v1792_v49 = vsub.f32 %v174_v48, %v1780_v13  ;;  %v1794_v51 = vand.u32 4294901760, %v172_v40  ;;  %v1796_v52 = vand.u32 4294901760, %v187_v35  ;;  %1183 = vmatprep.subr.mxu0 %v1778_v42 }
  0x3c   : > { %1213 = vmatpush3.msra.mxu1 %v351_v59  ;;  %v1800_v50 = vsub.f32 %v189_v53, %v1782_v44  ;;  %v1803_v39 = vsub.f32 %v173_v54, %v1784_v45  ;;  %v1806_v58 = vsub.f32 %v188_v55, %v1786_v38  ;;  %v1808_v47 = vand.u32 4294901760, %v171_v12  ;;  %1184 = vmatpush3.msra.mxu0 %v1780_v13 }
  0x3d   : > { %2247 = vst [vmem:[#allocation10_spill] sm:$0xff] %v1789_v46  ;;  %2248 = vst [vmem:[#allocation11_spill] sm:$0xff] %v1792_v49  ;;  %1214 = vmatprep.subr.mxu1 %v470_v36  ;;  %v2193_v48 = vand.u32 4294901760, %v1789_v46  ;;  %v2194_v34 = vand.u32 4294901760, %v1792_v49  ;;  %v1814_v59 = vsub.f32 %v172_v40, %v1794_v51  ;;  %v1817_v53 = vsub.f32 %v187_v35, %v1796_v52 }
  0x3e   : > { %2249 = vst [vmem:[#allocation12_spill] sm:$0xff] %v1800_v50  ;;  %2250 = vst [vmem:[#allocation13_spill] sm:$0xff] %v1803_v39  ;;  %1185 = vmatprep.subr.mxu0 %v1782_v44  ;;  %1215 = vmatpush3.msra.mxu1 %v358_v41  ;;  %v2198_v54 = vand.u32 4294901760, %v1800_v50  ;;  %v2199_v55 = vand.u32 4294901760, %v1803_v39  ;;  %v2205_v33 = vand.u32 4294901760, %v1806_v58  ;;  %v1824_v36 = vsub.f32 %v171_v12, %v1808_v47 }
  0x3f   : > { %2251 = vst [vmem:[#allocation14_spill] sm:$0xff] %v1806_v58  ;;  %2252 = vst [vmem:[#allocation15_spill] sm:$0xff] %v1814_v59  ;;  %1186 = vmatpush3.msra.mxu0 %v1784_v45  ;;  %1216 = vmatprep.subr.mxu1 %v477_v32  ;;  %v483_v35 = vsub.f32 %v1789_v46, %v2193_v48  ;;  %v371_v41 = vsub.f32 %v1792_v49, %v2194_v34  ;;  %v2212_v40 = vand.u32 4294901760, %v1814_v59  ;;  %v183_v46 = vld [vmem:[#allocation2 + $0x80] sm:$0xff] }
  0x40   : > { %2253 = vst [vmem:[#allocation16_spill] sm:$0xff] %v1817_v53  ;;  %2254 = vst [vmem:[#allocation17_spill] sm:$0xff] %v1824_v36  ;;  %v2215_v29 = vand.u32 4294901760, %v1817_v53  ;;  %1187 = vmatprep.subr.mxu0 %v1786_v38  ;;  %1217 = vmatpush3.msra.mxu1 %v365_v43  ;;  %v490_v12 = vsub.f32 %v1800_v50, %v2198_v54  ;;  %v378_v32 = vsub.f32 %v1803_v39, %v2199_v55  ;;  %v169_v39 = vld [vmem:[#allocation2 + $0x10] sm:$0xff]  ;;  %v184_v50 = vld [vmem:[#allocation2 + $0x88] sm:$0xff] }
  0x41   : > { %v497_v48 = vsub.f32 %v1806_v58, %v2205_v33  ;;  %1188 = vmatpush3.msra.mxu0 %v1794_v51  ;;  %v484_v24 = vand.u32 4294901760, %v483_v35  ;;  %v372_v43 = vand.u32 4294901760, %v371_v41  ;;  %v385_v54 = vsub.f32 %v1814_v59, %v2212_v40  ;;  %v168_v41 = vld [vmem:[#allocation2 + $0x8] sm:$0xff] }
  0x42   : > { %v504_v55 = vsub.f32 %v1817_v53, %v2215_v29  ;;  %1189 = vmatprep.subr.mxu0 %v1796_v52  ;;  %v491_v33 = vand.u32 4294901760, %v490_v12  ;;  %v379_v34 = vand.u32 4294901760, %v378_v32  ;;  %v2255_v49 = vand.u32 4294901760, %v1824_v36 }
  0x43   : > { %v498_v58 = vand.u32 4294901760, %v497_v48  ;;  %1190 = vmatpush3.msra.mxu0 %v1808_v47  ;;  %1218 = vmatprep.subr.mxu1 %v484_v24  ;;  %v386_v40 = vand.u32 4294901760, %v385_v54  ;;  %v1858_v29 = vand.u32 4294901760, %v186_v28  ;;  %v1860_v53 = vand.u32 4294901760, %v170_v27 }
  0x44   : > { %v392_v35 = vsub.f32 %v1824_v36, %v2255_v49  ;;  %v505_v59 = vand.u32 4294901760, %v504_v55  ;;  %1219 = vmatpush3.msra.mxu1 %v372_v43  ;;  %v1862_v32 = vand.u32 4294901760, %v185_v23  ;;  %v1864_v48 = vand.u32 4294901760, %v169_v39 }
  0x45   : > { %2256 = vst [vmem:[#allocation18_spill] sm:$0xff] %v1860_v53  ;;  %v1866_v31 = vand.u32 4294901760, %v184_v50  ;;  %1220 = vmatprep.subr.mxu1 %v491_v33  ;;  %v1869_v49 = vsub.f32 %v186_v28, %v1858_v29  ;;  %v1872_v24 = vsub.f32 %v170_v27, %v1860_v53  ;;  %v1874_v54 = vand.u32 4294901760, %v168_v41  ;;  %1191 = vmatprep.subr.mxu0 %v1858_v29 }
  0x46   : > { %v393_v12 = vand.u32 4294901760, %v392_v35  ;;  %v1876_v55 = vand.u32 4294901760, %v183_v46  ;;  %1221 = vmatpush3.msra.mxu1 %v379_v34  ;;  %v1880_v43 = vsub.f32 %v185_v23, %v1862_v32  ;;  %v1883_v35 = vsub.f32 %v169_v39, %v1864_v48  ;;  %1192 = vmatpush3.msra.mxu0 %v1860_v53 }
  0x47   : > { %2257 = vst [vmem:[#allocation19_spill] sm:$0xff] %v1869_v49  ;;  %2258 = vst [vmem:[#allocation20_spill] sm:$0xff] %v1872_v24  ;;  %v1886_v33 = vsub.f32 %v184_v50, %v1866_v31  ;;  %v1888_v28 = vand.u32 4294901760, %v167_v37  ;;  %1222 = vmatprep.subr.mxu1 %v498_v58  ;;  %v2226_v27 = vand.u32 4294901760, %v1869_v49  ;;  %v2229_v36 = vand.u32 4294901760, %v1872_v24  ;;  %1193 = vmatprep.subr.mxu0 %v1862_v32 }
  0x48   : > { %2259 = vst [vmem:[#allocation21_spill] sm:$0xff] %v1880_v43  ;;  %2260 = vst [vmem:[#allocation22_spill] sm:$0xff] %v1883_v35  ;;  %v1894_v34 = vsub.f32 %v168_v41, %v1874_v54  ;;  %v1897_v23 = vsub.f32 %v183_v46, %v1876_v55  ;;  %1223 = vmatpush3.msra.mxu1 %v386_v40  ;;  %v2232_v50 = vand.u32 4294901760, %v1880_v43  ;;  %1194 = vmatpush3.msra.mxu0 %v1864_v48 }
  0x49   : > { %v1904_v58 = vsub.f32 %v167_v37, %v1888_v28  ;;  %1224 = vmatprep.subr.mxu1 %v505_v59  ;;  %v511_v46 = vsub.f32 %v1869_v49, %v2226_v27  ;;  %v399_v40 = vsub.f32 %v1872_v24, %v2229_v36  ;;  %1195 = vmatprep.subr.mxu0 %v1866_v31  ;;  %v2261_v59 = vand.u32 4294901760, %v1883_v35 }
  0x4a   : > { %1225 = vmatpush3.msra.mxu1 %v393_v12  ;;  %v518_v37 = vsub.f32 %v1880_v43, %v2232_v50  ;;  %v2262_v27 = vand.u32 4294901760, %v1886_v33  ;;  %1196 = vmatpush3.msra.mxu0 %v1874_v54  ;;  %v2263_v12 = vand.u32 4294901760, %v1894_v34  ;;  %v2264_v50 = vand.u32 4294901760, %v1897_v23 }
  0x4b   : > { %v406_v53 = vsub.f32 %v1883_v35, %v2261_v59  ;;  %v2237_v36 = vand.u32 4294901760, %v1904_v58  ;;  %v512_v39 = vand.u32 4294901760, %v511_v46  ;;  %v400_v41 = vand.u32 4294901760, %v399_v40  ;;  %1197 = vmatprep.subr.mxu0 %v1876_v55 }
  0x4c   : > { %v525_v49 = vsub.f32 %v1886_v33, %v2262_v27  ;;  %v413_v24 = vsub.f32 %v1894_v34, %v2263_v12  ;;  %v532_v43 = vsub.f32 %v1897_v23, %v2264_v50  ;;  %v519_v59 = vand.u32 4294901760, %v518_v37  ;;  %1198 = vmatpush3.msra.mxu0 %v1888_v28 }
  0x4d   : > { %v407_v35 = vand.u32 4294901760, %v406_v53  ;;  %v420_v27 = vsub.f32 %v1904_v58, %v2237_v36  ;;  %1226 = vmatprep.subr.mxu1 %v512_v39  ;;  %1237 = vmatprep.subr.mxu0 %v1629_v15  ;;  %v155_v53 = vlaneseq  ;;  %v2274_v36 = vld [vmem:[#allocation15_spill] sm:$0xff] }
  0x4e   : > { %v526_v46 = vand.u32 4294901760, %v525_v49  ;;  %1227 = vmatpush3.msra.mxu1 %v400_v41  ;;  %v414_v40 = vand.u32 4294901760, %v413_v24  ;;  %v533_v12 = vand.u32 4294901760, %v532_v43  ;;  %v1529_v24 = vmov 0.0  }
  0x4f   : > { %1228 = vmatprep.subr.mxu1 %v519_v59  ;;  %v421_v50 = vand.u32 4294901760, %v420_v27  ;;  %v1940_v37 = vand.u32 127, %v155_v53  ;;  %v2238_v41 = vmov 1.0  }
  0x50   : > { %1229 = vmatpush3.msra.mxu1 %v407_v35 }
  0x51   : > { %1230 = vmatprep.subr.mxu1 %v526_v46  ;;  %2265 = vst [vmem:[#allocation23_spill] sm:$0xff] %v1940_v37  ;;  %v1943_v39 = vadd.s32 128, %v1940_v37 }
  0x52   : > { %1231 = vmatpush3.msra.mxu1 %v414_v40 }
  0x53   : > { %1232 = vmatprep.subr.mxu1 %v533_v12 }
  0x54   : > { %1233 = vmatpush3.msra.mxu1 %v421_v50 }
  0x55   : > { %1272 = vmatprep.subr.mxu1 %v1618_v4 }
  0xa6   : > { %v1945_v49 = vpop.permute.xlu0 %159 }
  0xa7   : > { %vm161_vm0 = vcmp.eq.s32.totalorder %v1945_v49, %v1940_v37  ;;  %vm162_vm1 = vcmp.eq.s32.totalorder %v1945_v49, %v1943_v39  ;;  %v2276_v37 = vld [vmem:[#allocation17_spill] sm:$0xff] }
  0xa8   : > { %v1155_v43 = vsel %vm161_vm0, 1.0, %v1529_v24  ;;  %v1156_v35 = vsel %vm162_vm1, 1.0, %v1529_v24  ;;  %1157 = vmatprep.mubr.msk.f32.mxu1 %vm162_vm1, %v2238_v41 }
  0xa9   : > { %v296_v59 = vsub.f32 %v1156_v35, %v1156_v35  ;;  %v1961_v27 = vsub.f32 %v1155_v43, %v1155_v43  ;;  %1158 = vmatmul.mubr.msk.f32.vlgmr.msra.gmra.mxu1 %vm161_vm0, %v2238_v41  ;;  %v2266_v43 = vld [vmem:[#allocation8_spill] sm:$0xff]  ;;  %v2267_v35 = vld [vmem:[#allocation9_spill] sm:$0xff] }
  0xaa   : > { %1273 = vmatpush3.msra.mxu1 %v1620_v5  ;;  %v2275_v41 = vld [vmem:[#allocation16_spill] sm:$0xff] }
  0xab   : > { %1274 = vmatprep.subr.mxu1 %v1622_v9  ;;  %v297_v46 = vand.u32 4294901760, %v296_v59  ;;  %v303_v40 = vand.u32 4294901760, %v1961_v27 }
  0xac   : > { %1275 = vmatpush3.msra.mxu1 %v1624_v10 }
  0xad   : > { %1276 = vmatprep.subr.mxu1 %v1626_v11  ;;  %780 = vmatprep.mubr.f32.mxu1 %v297_v46  ;;  %v298_v12 = vsub.f32 %v296_v59, %v297_v46  ;;  %v304_v50 = vsub.f32 %v1961_v27, %v303_v40  ;;  %v2269_v46 = vld [vmem:[#allocation18_spill] sm:$0xff] }
  0xae   : > { %1277 = vmatpush3.msra.mxu1 %v1634_v17 }
  0xaf   : > { %1278 = vmatprep.subr.mxu1 %v1636_v18  ;;  %v299_v53 = vand.u32 4294901760, %v298_v12  ;;  %v305_v24 = vand.u32 4294901760, %v304_v50  ;;  %v2270_v12 = vld [vmem:[#allocation11_spill] sm:$0xff]  ;;  %v2271_v50 = vld [vmem:[#allocation12_spill] sm:$0xff] }
  0xb0   : > { %1279 = vmatpush3.msra.mxu1 %v1648_v22 }
  0xb1   : > { %1280 = vmatprep.subr.mxu1 %v1698_v56  ;;  %300 = vmatprep.mubr.f32.mxu0 %v299_v53  ;;  %v2272_v53 = vld [vmem:[#allocation13_spill] sm:$0xff] }
  0xb2   : > { %1281 = vmatpush3.msra.mxu1 %v1700_v57  ;;  %306 = vmatmul.mubr.f32.vlgmr.msra.gmra.mxu0 %v305_v24  ;;  %v2273_v24 = vld [vmem:[#allocation14_spill] sm:$0xff] }
  0xb3   : > { %1238 = vmatpush3.msra.mxu0 %v1632_v16  ;;  %1282 = vmatprep.subr.mxu1 %v1702_v60 }
  0xb4   : > { %1239 = vmatprep.subr.mxu0 %v1640_v19  ;;  %673 = vmatprep.mubr.f32.mxu0 %v296_v59  ;;  %v2268_v59 = vld [vmem:[#allocation10_spill] sm:$0xff] }
  0xb5   : > { %1283 = vmatpush3.msra.mxu1 %v1704_v61  ;;  %1240 = vmatpush3.msra.mxu0 %v1643_v20 }
  0xb6   : > { %1284 = vmatprep.subr.mxu1 %v1706_v62  ;;  %1241 = vmatprep.subr.mxu0 %v1646_v21 }
  0xb7   : > { %1285 = vmatpush3.msra.mxu1 %v1714_v1  ;;  %1242 = vmatpush3.msra.mxu0 %v1654_v25 }
  0xb8   : > { %1286 = vmatprep.subr.mxu1 %v1716_v2  ;;  %1243 = vmatprep.subr.mxu0 %v1657_v26 }
  0xb9   : > { %1287 = vmatpush3.msra.mxu1 %v1728_v8  ;;  %1244 = vmatpush3.msra.mxu0 %v1664_v30 }
  0xba   : > { %1288 = vmatprep.subr.mxu1 %v1778_v42  ;;  %1245 = vmatprep.subr.mxu0 %v1709_v63 }
  0xbb   : > { %1289 = vmatpush3.msra.mxu1 %v1780_v13  ;;  %1246 = vmatpush3.msra.mxu0 %v1712_v0 }
  0xbc   : > { %1290 = vmatprep.subr.mxu1 %v1782_v44  ;;  %1247 = vmatprep.subr.mxu0 %v1720_v3 }
  0xbd   : > { %1291 = vmatpush3.msra.mxu1 %v1784_v45  ;;  %1248 = vmatpush3.msra.mxu0 %v1723_v6 }
  0xbe   : > { %1292 = vmatprep.subr.mxu1 %v1786_v38  ;;  %1249 = vmatprep.subr.mxu0 %v1726_v7 }
  0xbf   : > { %1293 = vmatpush3.msra.mxu1 %v1794_v51  ;;  %1250 = vmatpush3.msra.mxu0 %v1734_v14 }
  0xc0   : > { %1294 = vmatprep.subr.mxu1 %v1796_v52  ;;  %1251 = vmatprep.subr.mxu0 %v2266_v43 }
  0xc1   : > { %1295 = vmatpush3.msra.mxu1 %v1808_v47  ;;  %1252 = vmatpush3.msra.mxu0 %v2267_v35 }
  0xc2   : > { %1296 = vmatprep.subr.mxu1 %v1858_v29  ;;  %1253 = vmatprep.subr.mxu0 %v2268_v59 }
  0xc3   : > { %1297 = vmatpush3.msra.mxu1 %v2269_v46  ;;  %1254 = vmatpush3.msra.mxu0 %v2270_v12 }
  0xc4   : > { %1298 = vmatprep.subr.mxu1 %v1862_v32  ;;  %1255 = vmatprep.subr.mxu0 %v2271_v50 }
  0xc5   : > { %1299 = vmatpush3.msra.mxu1 %v1864_v48  ;;  %1256 = vmatpush3.msra.mxu0 %v2272_v53  ;;  %v2277_v53 = vld [vmem:[#allocation19_spill] sm:$0xff] }
  0xc6   : > { %1300 = vmatprep.subr.mxu1 %v1866_v31  ;;  %1257 = vmatprep.subr.mxu0 %v2273_v24  ;;  %v2278_v24 = vmov 1.0  }
  0xc7   : > { %1301 = vmatpush3.msra.mxu1 %v1874_v54  ;;  %1258 = vmatpush3.msra.mxu0 %v2274_v36  ;;  %v2279_v36 = vld [vmem:[#allocation20_spill] sm:$0xff] }
  0xc8   : > { %1302 = vmatprep.subr.mxu1 %v1876_v55  ;;  %1259 = vmatprep.subr.mxu0 %v2275_v41  ;;  %v2280_v41 = vld [vmem:[#allocation21_spill] sm:$0xff] }
  0xc9   : > { %1303 = vmatpush3.msra.mxu1 %v1888_v28  ;;  %1260 = vmatpush3.msra.mxu0 %v2276_v37 }
  0xca   : > { %784 = vmatmul.mubr.f32.vlgmr.msra.gmra.mxu1 %v303_v40  ;;  %1342 = vmatprep.subr.mxu1 %v1618_v4  ;;  %v2281_v40 = vld [vmem:[#allocation22_spill] sm:$0xff]  ;;  %v2282_v4 = vand.u32 4294901760, %v1629_v15  ;;  %v2287_v15 = vand.u32 4294901760, %v1654_v25  ;;  %v2295_v25 = vand.u32 4294901760, %v1734_v14 }
  0xcb   : > { %1261 = vmatprep.subr.mxu0 %v2277_v53  ;;  %1343 = vmatpush3.msra.mxu1 %v1620_v5  ;;  %v2283_v5 = vand.u32 4294901760, %v1632_v16  ;;  %v2288_v16 = vand.u32 4294901760, %v1657_v26  ;;  %v2296_v26 = vand.u32 4294901760, %v2266_v43  ;;  %v2314_v14 = vand.u32 4294901760, %v2281_v40 }
  0xcc   : > { %1161 = vmatprep.mubr.msk.f32.mxu1 %vm162_vm1, %v2278_v24  ;;  %1262 = vmatpush3.msra.mxu0 %v2279_v36 }
  0xcd   : > { %1344 = vmatprep.subr.mxu1 %v1622_v9  ;;  %1263 = vmatprep.subr.mxu0 %v2280_v41  ;;  %v2284_v9 = vand.u32 4294901760, %v1640_v19  ;;  %v2291_v19 = vand.u32 4294901760, %v1712_v0 }
  0xce   : > { %1345 = vmatpush3.msra.mxu1 %v1624_v10  ;;  %1264 = vmatpush3.msra.mxu0 %v2281_v40  ;;  %v2285_v10 = vand.u32 4294901760, %v1643_v20  ;;  %v2292_v20 = vand.u32 4294901760, %v1720_v3  ;;  %v2309_v3 = vand.u32 4294901760, %v2276_v37 }
  0xcf   : > { %1346 = vmatprep.subr.mxu1 %v1626_v11  ;;  %1265 = vmatprep.subr.mxu0 %v1886_v33  ;;  %v2286_v11 = vand.u32 4294901760, %v1646_v21  ;;  %v2293_v21 = vand.u32 4294901760, %v1723_v6 }
  0xd0   : > { %1347 = vmatpush3.msra.mxu1 %v1634_v17  ;;  %1266 = vmatpush3.msra.mxu0 %v1894_v34  ;;  %v2289_v17 = vand.u32 4294901760, %v1664_v30  ;;  %v2297_v30 = vand.u32 4294901760, %v2267_v35 }
  0xd1   : > { %1348 = vmatprep.subr.mxu1 %v1636_v18  ;;  %1267 = vmatprep.subr.mxu0 %v1897_v23  ;;  %v2290_v18 = vand.u32 4294901760, %v1709_v63  ;;  %v2305_v63 = vld [vmem:[#allocation15_spill] sm:$0xff] }
  0xd2   : > { %1349 = vmatpush3.msra.mxu1 %v1648_v22  ;;  %1268 = vmatpush3.msra.mxu0 %v1904_v58  ;;  %v2294_v22 = vand.u32 4294901760, %v1726_v7  ;;  %v2306_v0 = vand.u32 4294901760, %v2305_v63  ;;  %v2311_v7 = vand.u32 4294901760, %v2277_v53 }
  0xd3   : > { %1350 = vmatprep.subr.mxu1 %v1698_v56  ;;  %676 = vmatmul.mubr.f32.vlgmr.msra.gmra.mxu0 %v1961_v27  ;;  %v2299_v56 = vand.u32 4294901760, %v2270_v12 }
  0xd4   : > { %1307 = vmatprep.subr.mxu0 %v2282_v4  ;;  %1351 = vmatpush3.msra.mxu1 %v1700_v57  ;;  %v2300_v57 = vand.u32 4294901760, %v2271_v50 }
  0xd5   : > { %1308 = vmatpush3.msra.mxu0 %v2283_v5  ;;  %1159 = vmatprep.mubr.msk.f32.mxu0 %vm162_vm1, %v2278_v24 }
  0xd6   : > { %1352 = vmatprep.subr.mxu1 %v1702_v60  ;;  %1309 = vmatprep.subr.mxu0 %v2284_v9  ;;  %v2301_v60 = vld [vmem:[#allocation13_spill] sm:$0xff] }
  0xd7   : > { %1353 = vmatpush3.msra.mxu1 %v1704_v61  ;;  %1310 = vmatpush3.msra.mxu0 %v2285_v10  ;;  %v2302_v61 = vand.u32 4294901760, %v2301_v60 }
  0xd8   : > { %1354 = vmatprep.subr.mxu1 %v1706_v62  ;;  %1311 = vmatprep.subr.mxu0 %v2286_v11 }
  0xd9   : > { %1355 = vmatpush3.msra.mxu1 %v1714_v1  ;;  %1312 = vmatpush3.msra.mxu0 %v2287_v15  ;;  %v2307_v1 = vld [vmem:[#allocation16_spill] sm:$0xff] }
  0xda   : > { %1356 = vmatprep.subr.mxu1 %v1716_v2  ;;  %1313 = vmatprep.subr.mxu0 %v2288_v16  ;;  %v2308_v2 = vand.u32 4294901760, %v2307_v1 }
  0xdb   : > { %1357 = vmatpush3.msra.mxu1 %v1728_v8  ;;  %1314 = vmatpush3.msra.mxu0 %v2289_v17  ;;  %v2312_v8 = vand.u32 4294901760, %v2279_v36 }
  0xdc   : > { %1358 = vmatprep.subr.mxu1 %v1778_v42  ;;  %1315 = vmatprep.subr.mxu0 %v2290_v18  ;;  %v2316_v42 = vand.u32 4294901760, %v1894_v34 }
  0xdd   : > { %1359 = vmatpush3.msra.mxu1 %v1780_v13  ;;  %1316 = vmatpush3.msra.mxu0 %v2291_v19  ;;  %v2313_v13 = vand.u32 4294901760, %v2280_v41 }
  0xde   : > { %1360 = vmatprep.subr.mxu1 %v1782_v44  ;;  %1317 = vmatprep.subr.mxu0 %v2292_v20  ;;  %v2317_v44 = vand.u32 4294901760, %v1897_v23 }
  0xdf   : > { %1361 = vmatpush3.msra.mxu1 %v1784_v45  ;;  %1318 = vmatpush3.msra.mxu0 %v2293_v21  ;;  %v2318_v45 = vand.u32 4294901760, %v1904_v58 }
  0xe0   : > { %1362 = vmatprep.subr.mxu1 %v1786_v38  ;;  %1319 = vmatprep.subr.mxu0 %v2294_v22  ;;  %v2298_v38 = vand.u32 4294901760, %v2268_v59 }
  0xe1   : > { %1363 = vmatpush3.msra.mxu1 %v1794_v51  ;;  %1320 = vmatpush3.msra.mxu0 %v2295_v25 }
  0xe2   : > { %1364 = vmatprep.subr.mxu1 %v1796_v52  ;;  %1321 = vmatprep.subr.mxu0 %v2296_v26 }
  0xe3   : > { %1365 = vmatpush3.msra.mxu1 %v1808_v47  ;;  %1322 = vmatpush3.msra.mxu0 %v2297_v30 }
  0xe4   : > { %1366 = vmatprep.subr.mxu1 %v1858_v29  ;;  %1323 = vmatprep.subr.mxu0 %v2298_v38  ;;  %v2303_v29 = vld [vmem:[#allocation14_spill] sm:$0xff] }
  0xe5   : > { %1367 = vmatpush3.msra.mxu1 %v2269_v46  ;;  %1324 = vmatpush3.msra.mxu0 %v2299_v56  ;;  %v2304_v62 = vand.u32 4294901760, %v2303_v29 }
  0xe6   : > { %1368 = vmatprep.subr.mxu1 %v1862_v32  ;;  %1325 = vmatprep.subr.mxu0 %v2300_v57 }
  0xe7   : > { %1369 = vmatpush3.msra.mxu1 %v1864_v48  ;;  %1326 = vmatpush3.msra.mxu0 %v2302_v61 }
  0xe8   : > { %1370 = vmatprep.subr.mxu1 %v1866_v31  ;;  %1327 = vmatprep.subr.mxu0 %v2304_v62  ;;  %v2315_v31 = vand.u32 4294901760, %v1886_v33 }
  0xe9   : > { %1371 = vmatpush3.msra.mxu1 %v1874_v54  ;;  %1328 = vmatpush3.msra.mxu0 %v2306_v0 }
  0xea   : > { %1372 = vmatprep.subr.mxu1 %v1876_v55  ;;  %1329 = vmatprep.subr.mxu0 %v2308_v2 }
  0xeb   : > { %1373 = vmatpush3.msra.mxu1 %v1888_v28  ;;  %1330 = vmatpush3.msra.mxu0 %v2309_v3 }
  0xec   : > { %1162 = vmatmul.mubr.msk.f32.vlgmr.msra.gmra.mxu1 %vm161_vm0, %v2278_v24  ;;  %1331 = vmatprep.subr.mxu0 %v2311_v7 }
  0xed   : > { %1332 = vmatpush3.msra.mxu0 %v2312_v8 }
  0xee   : > { %1333 = vmatprep.subr.mxu0 %v2313_v13 }
  0xef   : > { %1334 = vmatpush3.msra.mxu0 %v2314_v14 }
  0xf0   : > { %1335 = vmatprep.subr.mxu0 %v2315_v31 }
  0xf1   : > { %1336 = vmatpush3.msra.mxu0 %v2316_v42 }
  0xf2   : > { %1337 = vmatprep.subr.mxu0 %v2317_v44 }
  0xf3   : > { %1338 = vmatpush3.msra.mxu0 %v2318_v45 }
  0xf4   : > { %1160 = vmatmul.mubr.msk.f32.vlgmr.msra.gmra.mxu0 %vm161_vm0, %v2278_v24 }
 0x169   : > { %v1234_v52 = vpop.f32.mrf.mxu1 }
 0x16b   : > { %v1235_v32 = vpop.f32.mrf.mxu1 }
 0x16c   : > { %v1236_v33 = vadd.f32 %v1235_v32, %v1234_v52 }
 0x172   : > { %v1199_v51 = vpop.f32.mrf.mxu0 }
 0x174   : > { %v1200_v47 = vpop.f32.mrf.mxu0 }
 0x175   : > { %v1201_v55 = vadd.f32 %v1200_v47, %v1199_v51 }
 0x177   : > { %v540_v23 = vadd.f32 %v1236_v33, %v1201_v55 }
 0x18a   : > { %v1304_v48 = vpop.f32.mrf.mxu1 }
 0x18c   : > { %v1305_v34 = vpop.f32.mrf.mxu1 }
 0x18d   : > { %v1306_v49 = vadd.f32 %v1305_v34, %v1304_v48 }
 0x193   : > { %v1269_v36 = vpop.f32.mrf.mxu0 }
 0x195   : > { %v1270_v54 = vpop.f32.mrf.mxu0 }
 0x196   : > { %v1271_v28 = vadd.f32 %v1270_v54, %v1269_v36 }
 0x198   : > { %v678_v37 = vadd.f32 %v1271_v28, %v540_v23 }
 0x19a   : > { %v786_v43 = vadd.f32 %v1306_v49, %v678_v37 }
 0x1ac   : > { %v1374_v58 = vpop.f32.mrf.mxu1 }
 0x1ae   : > { %v1375_v41 = vpop.f32.mrf.mxu1 }
 0x1af   : > { %v1376_v59 = vadd.f32 %v1375_v41, %v1374_v58 }
 0x1b4   : > { %v1339_v39 = vpop.f32.mrf.mxu0 }
 0x1b6   : > { %v1340_v27 = vpop.f32.mrf.mxu0 }
 0x1b7   : > { %v1341_v35 = vadd.f32 %v1340_v27, %v1339_v39 }
 0x1b9   : > { %v954_v46 = vadd.f32 %v1341_v35, %v786_v43 }
 0x1bb   : > { %v1058_v12 = vadd.f32 %v1376_v59, %v954_v46 }
 0x1bd   : > { %1061 = vst [vmem:[%s149_s14] sm:$0xff] %v1058_v12 }
 0x1be   : > { %1472 = shalt.err (!%p1469_p0)
}
 0x1bf   : > { %s1473_s27 = scalar_lea.hbm %s1074_s22, 128  ;;  %s1477_s30 = scalar_lea.hbm %s2180_s2, 256 }
 0x1c0   : > { %p1474_p1 = scmp.ne.s32.totalorder %s1074_s22, %s1473_s27  ;;  %p1478_p4 = scmp.lt.s32.totalorder %s1074_s22, %s2180_s2 }
 0x1c1   : > { %p1479_p7 = scmp.lt.s32.totalorder %s1477_s30, %s1473_s27 }
 0x1c2   : > { %p1475_p2 = pnand %p1474_p1, %p1585_p5 }
 0x1c3   : > { %p1480_p8 = por %p1479_p7, %p1478_p4 }
 0x1c4   : > { %p1476_p3 = pneg %p1475_p2 }
 0x1c6   : > { %p1481_p6 = pnand %p1480_p8, %p1476_p3 }
 0x1c8   : > { %1484 = shalt.err (!%p1481_p6)
}
 0x1c9   : > { %1381 = dma.vmem_to_hbm [thread:$0]  (%p1585_p5), %s1077_s16, 128, %s1074_s22, %s1063_s23  }
 0x1ca PF: > { %p1393_p9 = scmp.ge.s32.totalorder %s1523_s12, 2  ;;  %s1088_s5 = sand.u32 1, %s1511_s9  }
 0x1cb   : > { %p2319_p10 = scmp.ne.s32.totalorder %s2243_s20, 0  ;;  %s1089_s6 = scalar_lea.sflag [#allocation4], %s1088_s5 }
 0x1cd   : > { %p1388_p11 = pnand %p1393_p9, %p2319_p10 }
 0x1cf   : > { %p1389_p12 = pneg %p1388_p11 }
 0x1d1   : > { %1506 = dma.done.wait (%p1389_p12), %s1089_s6, 128  }
 0x1d2   : > { %1508 = vsyncadd (%p1389_p12), %s1089_s6, 4294967168  ;;  %p13_p13 = scmp.ge.s32.totalorder %s1572_s15, 4   ;;  %s2320_s9 = smov %s1515_s10 }
 0x1d3   : > { %s2321_s10 = smov %s1519_s11  ;;  %s2322_s11 = smov %s1583_s18 }
 0x1d4   : > { %s2323_s12 = smov %s1572_s15  ;;  %15 = sbr.rel (!%p13_p13) target bundleno = 4 (0x4), region = 68 }
 0x1d9   :  { %1094 = vsyncpa [#allocation3], 1 }
 0x1da   :  { %1096 = vsyncpa [#allocation3 + $0x1], 1 }
 0x1db   :  { %1097 = vsyncpa [#allocation4], 1 }
 0x1dc   :  { %1099 = vsyncpa [#allocation4 + $0x1], 1 }

</bundles_post_ra>
